<compile_context>
chip_gen: v7x
topology: tpu7x:2x2x1
jax: 0.10.0
libtpu: 0.0.40
codegen_flags: <defaults>
</compile_context>

<pallas_src>
import functools

import jax
import jax.numpy as jnp
from jax import lax
from jax.experimental import pallas as pl
from jax.experimental.pallas import tpu as pltpu


def _round_up(x, m):
    return (x + m - 1) // m * m


def _conv_stats_kernel(x_hbm, w_ref, mask_ref, conv_ref, s1_ref, s2_ref,
                       xbuf, patch, sem, *, taps, cin_p, tile_l, tile_w):
    # x_hbm:   (N, Cin_p, Pflat)   zero-padded flat slab, left in HBM (pl.ANY)
    # w_ref:   (Cout_p, K=27*Cin_p) fused, lane-dense weight matrix (resident)
    # mask_ref:(tile_l, 1)         1.0 on valid (non-padding) output columns
    # conv_ref:(1, Cout_p, tile_l) raw conv output tile (no bias)
    # s1/s2:   (1, Cout_p, 1)      per-channel sum / sum-of-squares accumulators
    # xbuf:    (Cin_p, tile_w)     haloed input window scratch
    # patch:   (K, tile_l)         im2col patch scratch
    n = pl.program_id(0)
    t = pl.program_id(1)
    base = pl.multiple_of(t * tile_l, 128)

    # Manual DMA of the haloed window (overlapping windows are inexpressible
    # with blocked BlockSpecs).
    cp = pltpu.make_async_copy(x_hbm.at[n, :, pl.ds(base, tile_w)], xbuf, sem)
    cp.start()
    cp.wait()

    # Build the (27*Cin_p, tile_l) patch: each tap's lane-shift is paid once,
    # stores are sublane-aligned (multiples of Cin_p) and full lane width.
    for i, off in enumerate(taps):                 # static unroll (27 taps)
        patch[pl.ds(i * cin_p, cin_p), :] = xbuf[:, pl.ds(off, tile_l)]

    # ONE fused MXU matmul over the full K = 27*Cin_p contraction.
    conv = jnp.dot(w_ref[...], patch[...], preferred_element_type=jnp.float32)
    conv_ref[0] = conv

    # Masked per-channel statistics through the MXU (no lane-axis reductions).
    mask = mask_ref[...]                           # (tile_l, 1)
    s1 = jnp.dot(conv, mask, preferred_element_type=jnp.float32)
    s2 = jnp.dot(conv * conv, mask, preferred_element_type=jnp.float32)

    @pl.when(t == 0)
    def _():
        s1_ref[0] = s1
        s2_ref[0] = s2

    @pl.when(t > 0)
    def _():
        s1_ref[0] = s1_ref[0] + s1
        s2_ref[0] = s2_ref[0] + s2


def _norm_relu_kernel(conv_ref, a_ref, shift_ref, o_ref):
    # relu(gn(conv + bias) * gamma + beta)  ==  relu(conv * a + shift)
    y = conv_ref[0] * a_ref[0] + shift_ref[0]
    o_ref[0] = jnp.maximum(y, 0.0).astype(o_ref.dtype)


@functools.partial(jax.jit, static_argnames=("num_groups", "eps", "tile_l"))
def decoder_conv(x, w, b, gamma, beta, num_groups, eps=1e-5, tile_l=512):
    """x: (N, Cin, D, H, W) f32; w: (Cout, Cin, 3, 3, 3); b/gamma/beta: (Cout,)."""
    assert tile_l % 128 == 0
    N, Cin, D, H, W = x.shape
    Cout = w.shape[0]
    Dp, Hp, Wp = D + 2, H + 2, W + 2
    cpg = Cout // num_groups

    Cin_p = _round_up(Cin, 8)
    Cout_p = _round_up(Cout, 8)
    K = 27 * Cin_p

    # Flat padded-grid geometry: output column p = d*Hp*Wp + h*Wp + w, each of
    # the 27 conv taps is a static lane offset into the flattened slab.
    taps = tuple(kd * Hp * Wp + kh * Wp + kw
                 for kd in range(3) for kh in range(3) for kw in range(3))
    halo = taps[-1]

    out_cols = D * Hp * Wp                       # flat output columns actually used
    L = _round_up(out_cols, tile_l)              # lane-dense, tile-aligned width
    n_tiles = L // tile_l
    tile_w = _round_up(tile_l + halo, 128)       # haloed input window per tile

    # Slab must cover the real padded volume and the last tile's haloed window.
    need = max(Dp * Hp * Wp, (n_tiles - 1) * tile_l + tile_w)
    Dp_ext = -(-need // (Hp * Wp))               # ceil: extra zero depth planes
    Pflat = Dp_ext * Hp * Wp

    # Single fused pad (channels -> Cin_p, border 1, extra depth planes give the
    # flat tail padding), then flatten. Under jit this is one HBM pass.
    xp = jnp.pad(x, ((0, 0), (0, Cin_p - Cin),
                     (1, Dp_ext - D - 1), (1, 1), (1, 1)))
    x_flat = xp.reshape(N, Cin_p, Pflat)

    # Fused lane-dense weight matrix: column index = tap*Cin_p + cin.
    w_p = jnp.pad(w, ((0, Cout_p - Cout), (0, Cin_p - Cin),
                      (0, 0), (0, 0), (0, 0)))
    w_fused = jnp.transpose(w_p, (0, 2, 3, 4, 1)).reshape(Cout_p, K)

    # Valid-column mask (excludes h>=H / w>=W border and tail columns).
    p = jnp.arange(L)
    d_i = p // (Hp * Wp)
    h_i = (p % (Hp * Wp)) // Wp
    w_i = p % Wp
    mask_col = ((d_i < D) & (h_i < H) & (w_i < W)).astype(jnp.float32)
    mask_col = mask_col.reshape(L, 1)

    conv_kernel = functools.partial(_conv_stats_kernel, taps=taps, cin_p=Cin_p,
                                    tile_l=tile_l, tile_w=tile_w)

    # Pass 1: conv tiles + per-channel sums / sums-of-squares.
    conv_flat, s1, s2 = pl.pallas_call(
        conv_kernel,
        out_shape=(
            jax.ShapeDtypeStruct((N, Cout_p, L), jnp.float32),
            jax.ShapeDtypeStruct((N, Cout_p, 1), jnp.float32),
            jax.ShapeDtypeStruct((N, Cout_p, 1), jnp.float32),
        ),
        grid_spec=pltpu.PrefetchScalarGridSpec(
            num_scalar_prefetch=0,
            grid=(N, n_tiles),
            in_specs=[
                pl.BlockSpec(memory_space=pl.ANY),                  # slab (manual halo DMA)
                pl.BlockSpec((Cout_p, K), lambda n, t: (0, 0)),     # fused weights
                pl.BlockSpec((tile_l, 1), lambda n, t: (t, 0)),     # valid-column mask
            ],
            out_specs=[
                pl.BlockSpec((1, Cout_p, tile_l), lambda n, t: (n, 0, t)),
                pl.BlockSpec((1, Cout_p, 1), lambda n, t: (n, 0, 0)),
                pl.BlockSpec((1, Cout_p, 1), lambda n, t: (n, 0, 0)),
            ],
            scratch_shapes=[
                pltpu.VMEM((Cin_p, tile_w), jnp.float32),
                pltpu.VMEM((K, tile_l), jnp.float32),
                pltpu.SemaphoreType.DMA,
            ],
        ),
        compiler_params=pltpu.CompilerParams(
            dimension_semantics=("parallel", "arbitrary"),
            vmem_limit_bytes=32 * 1024 * 1024,
        ),
    )(x_flat, w_fused, mask_col)

    # Tiny per-group GroupNorm statistics in the jitted wrapper: fold the conv
    # bias analytically into the sums (no extra (C, L) sweep).
    nv = jnp.float32(D * H * W)
    s1c = s1[:, :Cout, 0]                        # (N, Cout)
    s2c = s2[:, :Cout, 0]
    bb = b[None, :]
    z1 = s1c + bb * nv
    z2 = s2c + (2.0 * s1c + bb * nv) * bb
    denom = nv * cpg
    g1 = z1.reshape(N, num_groups, cpg).sum(axis=2) / denom      # group mean
    g2 = z2.reshape(N, num_groups, cpg).sum(axis=2) / denom      # group E[x^2]
    var_g = jnp.maximum(g2 - g1 * g1, 0.0)                       # clamp cancellation
    inv_g = lax.rsqrt(var_g + eps)
    mean_c = jnp.repeat(g1, cpg, axis=1)                          # (N, Cout)
    inv_c = jnp.repeat(inv_g, cpg, axis=1)
    a_c = gamma[None, :] * inv_c
    shift_c = beta[None, :] + (bb - mean_c) * a_c
    a_p = jnp.pad(a_c, ((0, 0), (0, Cout_p - Cout))).reshape(N, Cout_p, 1)
    shift_p = jnp.pad(shift_c, ((0, 0), (0, Cout_p - Cout))).reshape(N, Cout_p, 1)

    # Pass 2: fused affine + ReLU; output aliases the conv buffer (P8).
    out_flat = pl.pallas_call(
        _norm_relu_kernel,
        out_shape=jax.ShapeDtypeStruct((N, Cout_p, L), jnp.float32),
        grid_spec=pltpu.PrefetchScalarGridSpec(
            num_scalar_prefetch=0,
            grid=(N, n_tiles),
            in_specs=[
                pl.BlockSpec((1, Cout_p, tile_l), lambda n, t: (n, 0, t)),
                pl.BlockSpec((1, Cout_p, 1), lambda n, t: (n, 0, 0)),
                pl.BlockSpec((1, Cout_p, 1), lambda n, t: (n, 0, 0)),
            ],
            out_specs=pl.BlockSpec((1, Cout_p, tile_l), lambda n, t: (n, 0, t)),
        ),
        compiler_params=pltpu.CompilerParams(
            dimension_semantics=("parallel", "parallel"),
            vmem_limit_bytes=32 * 1024 * 1024,
        ),
        input_output_aliases={0: 0},
    )(conv_flat, a_p, shift_p)

    # Crop flat padded-grid columns back to NCDHW (cheap slice, no transpose).
    out = out_flat[:, :Cout, :out_cols].reshape(N, Cout, D, Hp, Wp)
    return out[:, :, :, :H, :W]


def ref_forward(x, w, b, gamma, beta, num_groups, eps=1e-5):
    """Pure-JAX reference matching PyTorch DecoderConv.forward."""
    y = lax.conv_general_dilated(
        x, w, window_strides=(1, 1, 1),
        padding=((1, 1), (1, 1), (1, 1)),
        dimension_numbers=("NCDHW", "OIDHW", "NCDHW"))
    y = y + b.reshape(1, -1, 1, 1, 1)
    N, C, D, H, W = y.shape
    yg = y.reshape(N, num_groups, C // num_groups, D, H, W)
    mean = yg.mean(axis=(2, 3, 4, 5), keepdims=True)
    var = yg.var(axis=(2, 3, 4, 5), keepdims=True)
    yn = ((yg - mean) / jnp.sqrt(var + eps)).reshape(N, C, D, H, W)
    yn = yn * gamma.reshape(1, -1, 1, 1, 1) + beta.reshape(1, -1, 1, 1, 1)
    return jnp.maximum(yn, 0.0)


if __name__ == "__main__":
    # Small shapes consistent with the module: N=2, in_ch=4, out_ch=8, D=H=W=8.
    N, IN_CH, OUT_CH, D, H, W = 2, 4, 8, 8, 8, 8
    NUM_GROUPS = OUT_CH // 4

    key = jax.random.PRNGKey(0)
    kx, kw, kb, kg, kbe = jax.random.split(key, 5)
    x = jax.random.normal(kx, (N, IN_CH, D, H, W), dtype=jnp.float32)
    w = jax.random.normal(kw, (OUT_CH, IN_CH, 3, 3, 3), dtype=jnp.float32) * 0.1
    b = jax.random.normal(kb, (OUT_CH,), dtype=jnp.float32) * 0.1
    gamma = 1.0 + 0.1 * jax.random.normal(kg, (OUT_CH,), dtype=jnp.float32)
    beta = 0.1 * jax.random.normal(kbe, (OUT_CH,), dtype=jnp.float32)

    out = decoder_conv(x, w, b, gamma, beta, num_groups=NUM_GROUPS)
    out = jax.block_until_ready(out)

    ref = jax.block_until_ready(ref_forward(x, w, b, gamma, beta, NUM_GROUPS))
    assert out.shape == (N, OUT_CH, D, H, W), out.shape
    assert jnp.allclose(out, ref, atol=1e-4, rtol=1e-4), float(jnp.max(jnp.abs(out - ref)))

    print("KERNEL_OK")
</pallas_src>

<mosaic_0001>
module attributes {stable_mosaic.version = 11 : i64} {
  func.func @_conv_stats_kernel(%arg0: i32, %arg1: i32, %arg2: memref<2x8x1300xf32, #tpu.memory_space<any>>, %arg3: memref<8x216xf32, #tpu.memory_space<vmem>>, %arg4: memref<512x1xf32, #tpu.memory_space<vmem>>, %arg5: memref<1x8x512xf32, #tpu.memory_space<vmem>>, %arg6: memref<1x8x1xf32, #tpu.memory_space<vmem>>, %arg7: memref<1x8x1xf32, #tpu.memory_space<vmem>>, %arg8: memref<8x768xf32, #tpu.memory_space<vmem>>, %arg9: memref<216x512xf32, #tpu.memory_space<vmem>>, %arg10: memref<!tpu.dma_semaphore, #tpu.memory_space<semaphore_mem>>) attributes {dimension_semantics = [#tpu.dimension_semantics<parallel>, #tpu.dimension_semantics<arbitrary>], iteration_bounds = array<i64: 2, 2>, scalar_prefetch = 0 : i64, scratch_operands = 3 : i64, tpu.core_type = #tpu.core_type<tc>, window_params = [{}, {pipeline_mode = #tpu.pipeline_mode<synchronous>, transform_indices = @transform_1, window_bounds = array<i64: 8, 216>}, {transform_indices = @transform_2, window_bounds = array<i64: 512, 1>}, {transform_indices = @transform_3, window_bounds = array<i64: 1, 8, 512>}, {transform_indices = @transform_4, window_bounds = array<i64: 1, 8, 1>}, {transform_indices = @transform_5, window_bounds = array<i64: 1, 8, 1>}]} {
    %c512_i32 = arith.constant 512 : i32
    %0 = arith.muli %arg1, %c512_i32 : i32
    %1 = tpu.assume_multiple %0, 128 : i32
    %c0_i32 = arith.constant 0 : i32
    %2 = tpu.memref_slice %arg2[%arg0, %c0_i32, %1] : memref<2x8x1300xf32, #tpu.memory_space<any>> -> memref<1x8x768xf32, #tpu.memory_space<any>>
    %3 = tpu.memref_squeeze %2 : memref<1x8x768xf32, #tpu.memory_space<any>> -> memref<8x768xf32, #tpu.memory_space<any>>
    tpu.enqueue_dma source(%3 : memref<8x768xf32, #tpu.memory_space<any>>) target(%arg8 : memref<8x768xf32, #tpu.memory_space<vmem>>) target_semaphore(%arg10 : memref<!tpu.dma_semaphore, #tpu.memory_space<semaphore_mem>>)
    %c0_i32_0 = arith.constant 0 : i32
    %4 = tpu.memref_slice %arg2[%arg0, %c0_i32_0, %1] : memref<2x8x1300xf32, #tpu.memory_space<any>> -> memref<1x8x768xf32, #tpu.memory_space<any>>
    %5 = tpu.memref_squeeze %4 : memref<1x8x768xf32, #tpu.memory_space<any>> -> memref<8x768xf32, #tpu.memory_space<any>>
    tpu.wait_dma2 semaphore(%arg10 : memref<!tpu.dma_semaphore, #tpu.memory_space<semaphore_mem>>) src(%5 : memref<8x768xf32, #tpu.memory_space<any>>) dst(%arg8 : memref<8x768xf32, #tpu.memory_space<vmem>>)
    %c0 = arith.constant 0 : index
    %c0_1 = arith.constant 0 : index
    %6 = vector.load %arg8[%c0, %c0_1] : memref<8x768xf32, #tpu.memory_space<vmem>>, vector<8x512xf32>
    %c0_2 = arith.constant 0 : index
    %c0_3 = arith.constant 0 : index
    %7 = vector.load %arg9[%c0_2, %c0_3] : memref<216x512xf32, #tpu.memory_space<vmem>>, vector<8x512xf32>
    tpu.vector_store %arg9[%c0_2, %c0_3], %6 {strides = array<i32>} : memref<216x512xf32, #tpu.memory_space<vmem>>, vector<8x512xf32>,
    %c0_4 = arith.constant 0 : index
    %c1 = arith.constant 1 : index
    %8 = vector.load %arg8[%c0_4, %c1] : memref<8x768xf32, #tpu.memory_space<vmem>>, vector<8x512xf32>
    %c8 = arith.constant 8 : index
    %c0_5 = arith.constant 0 : index
    %9 = vector.load %arg9[%c8, %c0_5] : memref<216x512xf32, #tpu.memory_space<vmem>>, vector<8x512xf32>
    tpu.vector_store %arg9[%c8, %c0_5], %8 {strides = array<i32>} : memref<216x512xf32, #tpu.memory_space<vmem>>, vector<8x512xf32>,
    %c0_6 = arith.constant 0 : index
    %c2 = arith.constant 2 : index
    %10 = vector.load %arg8[%c0_6, %c2] : memref<8x768xf32, #tpu.memory_space<vmem>>, vector<8x512xf32>
    %c16 = arith.constant 16 : index
    %c0_7 = arith.constant 0 : index
    %11 = vector.load %arg9[%c16, %c0_7] : memref<216x512xf32, #tpu.memory_space<vmem>>, vector<8x512xf32>
    tpu.vector_store %arg9[%c16, %c0_7], %10 {strides = array<i32>} : memref<216x512xf32, #tpu.memory_space<vmem>>, vector<8x512xf32>,
    %c0_8 = arith.constant 0 : index
    %c10 = arith.constant 10 : index
    %12 = vector.load %arg8[%c0_8, %c10] : memref<8x768xf32, #tpu.memory_space<vmem>>, vector<8x512xf32>
    %c24 = arith.constant 24 : index
    %c0_9 = arith.constant 0 : index
    %13 = vector.load %arg9[%c24, %c0_9] : memref<216x512xf32, #tpu.memory_space<vmem>>, vector<8x512xf32>
    tpu.vector_store %arg9[%c24, %c0_9], %12 {strides = array<i32>} : memref<216x512xf32, #tpu.memory_space<vmem>>, vector<8x512xf32>,
    %c0_10 = arith.constant 0 : index
    %c11 = arith.constant 11 : index
    %14 = vector.load %arg8[%c0_10, %c11] : memref<8x768xf32, #tpu.memory_space<vmem>>, vector<8x512xf32>
    %c32 = arith.constant 32 : index
    %c0_11 = arith.constant 0 : index
    %15 = vector.load %arg9[%c32, %c0_11] : memref<216x512xf32, #tpu.memory_space<vmem>>, vector<8x512xf32>
    tpu.vector_store %arg9[%c32, %c0_11], %14 {strides = array<i32>} : memref<216x512xf32, #tpu.memory_space<vmem>>, vector<8x512xf32>,
    %c0_12 = arith.constant 0 : index
    %c12 = arith.constant 12 : index
    %16 = vector.load %arg8[%c0_12, %c12] : memref<8x768xf32, #tpu.memory_space<vmem>>, vector<8x512xf32>
    %c40 = arith.constant 40 : index
    %c0_13 = arith.constant 0 : index
    %17 = vector.load %arg9[%c40, %c0_13] : memref<216x512xf32, #tpu.memory_space<vmem>>, vector<8x512xf32>
    tpu.vector_store %arg9[%c40, %c0_13], %16 {strides = array<i32>} : memref<216x512xf32, #tpu.memory_space<vmem>>, vector<8x512xf32>,
    %c0_14 = arith.constant 0 : index
    %c20 = arith.constant 20 : index
    %18 = vector.load %arg8[%c0_14, %c20] : memref<8x768xf32, #tpu.memory_space<vmem>>, vector<8x512xf32>
    %c48 = arith.constant 48 : index
    %c0_15 = arith.constant 0 : index
    %19 = vector.load %arg9[%c48, %c0_15] : memref<216x512xf32, #tpu.memory_space<vmem>>, vector<8x512xf32>
    tpu.vector_store %arg9[%c48, %c0_15], %18 {strides = array<i32>} : memref<216x512xf32, #tpu.memory_space<vmem>>, vector<8x512xf32>,
    %c0_16 = arith.constant 0 : index
    %c21 = arith.constant 21 : index
    %20 = vector.load %arg8[%c0_16, %c21] : memref<8x768xf32, #tpu.memory_space<vmem>>, vector<8x512xf32>
    %c56 = arith.constant 56 : index
    %c0_17 = arith.constant 0 : index
    %21 = vector.load %arg9[%c56, %c0_17] : memref<216x512xf32, #tpu.memory_space<vmem>>, vector<8x512xf32>
    tpu.vector_store %arg9[%c56, %c0_17], %20 {strides = array<i32>} : memref<216x512xf32, #tpu.memory_space<vmem>>, vector<8x512xf32>,
    %c0_18 = arith.constant 0 : index
    %c22 = arith.constant 22 : index
    %22 = vector.load %arg8[%c0_18, %c22] : memref<8x768xf32, #tpu.memory_space<vmem>>, vector<8x512xf32>
    %c64 = arith.constant 64 : index
    %c0_19 = arith.constant 0 : index
    %23 = vector.load %arg9[%c64, %c0_19] : memref<216x512xf32, #tpu.memory_space<vmem>>, vector<8x512xf32>
    tpu.vector_store %arg9[%c64, %c0_19], %22 {strides = array<i32>} : memref<216x512xf32, #tpu.memory_space<vmem>>, vector<8x512xf32>,
    %c0_20 = arith.constant 0 : index
    %c100 = arith.constant 100 : index
    %24 = vector.load %arg8[%c0_20, %c100] : memref<8x768xf32, #tpu.memory_space<vmem>>, vector<8x512xf32>
    %c72 = arith.constant 72 : index
    %c0_21 = arith.constant 0 : index
    %25 = vector.load %arg9[%c72, %c0_21] : memref<216x512xf32, #tpu.memory_space<vmem>>, vector<8x512xf32>
    tpu.vector_store %arg9[%c72, %c0_21], %24 {strides = array<i32>} : memref<216x512xf32, #tpu.memory_space<vmem>>, vector<8x512xf32>,
    %c0_22 = arith.constant 0 : index
    %c101 = arith.constant 101 : index
    %26 = vector.load %arg8[%c0_22, %c101] : memref<8x768xf32, #tpu.memory_space<vmem>>, vector<8x512xf32>
    %c80 = arith.constant 80 : index
    %c0_23 = arith.constant 0 : index
    %27 = vector.load %arg9[%c80, %c0_23] : memref<216x512xf32, #tpu.memory_space<vmem>>, vector<8x512xf32>
    tpu.vector_store %arg9[%c80, %c0_23], %26 {strides = array<i32>} : memref<216x512xf32, #tpu.memory_space<vmem>>, vector<8x512xf32>,
    %c0_24 = arith.constant 0 : index
    %c102 = arith.constant 102 : index
    %28 = vector.load %arg8[%c0_24, %c102] : memref<8x768xf32, #tpu.memory_space<vmem>>, vector<8x512xf32>
    %c88 = arith.constant 88 : index
    %c0_25 = arith.constant 0 : index
    %29 = vector.load %arg9[%c88, %c0_25] : memref<216x512xf32, #tpu.memory_space<vmem>>, vector<8x512xf32>
    tpu.vector_store %arg9[%c88, %c0_25], %28 {strides = array<i32>} : memref<216x512xf32, #tpu.memory_space<vmem>>, vector<8x512xf32>,
    %c0_26 = arith.constant 0 : index
    %c110 = arith.constant 110 : index
    %30 = vector.load %arg8[%c0_26, %c110] : memref<8x768xf32, #tpu.memory_space<vmem>>, vector<8x512xf32>
    %c96 = arith.constant 96 : index
    %c0_27 = arith.constant 0 : index
    %31 = vector.load %arg9[%c96, %c0_27] : memref<216x512xf32, #tpu.memory_space<vmem>>, vector<8x512xf32>
    tpu.vector_store %arg9[%c96, %c0_27], %30 {strides = array<i32>} : memref<216x512xf32, #tpu.memory_space<vmem>>, vector<8x512xf32>,
    %c0_28 = arith.constant 0 : index
    %c111 = arith.constant 111 : index
    %32 = vector.load %arg8[%c0_28, %c111] : memref<8x768xf32, #tpu.memory_space<vmem>>, vector<8x512xf32>
    %c104 = arith.constant 104 : index
    %c0_29 = arith.constant 0 : index
    %33 = vector.load %arg9[%c104, %c0_29] : memref<216x512xf32, #tpu.memory_space<vmem>>, vector<8x512xf32>
    tpu.vector_store %arg9[%c104, %c0_29], %32 {strides = array<i32>} : memref<216x512xf32, #tpu.memory_space<vmem>>, vector<8x512xf32>,
    %c0_30 = arith.constant 0 : index
    %c112 = arith.constant 112 : index
    %34 = vector.load %arg8[%c0_30, %c112] : memref<8x768xf32, #tpu.memory_space<vmem>>, vector<8x512xf32>
    %c112_31 = arith.constant 112 : index
    %c0_32 = arith.constant 0 : index
    %35 = vector.load %arg9[%c112_31, %c0_32] : memref<216x512xf32, #tpu.memory_space<vmem>>, vector<8x512xf32>
    tpu.vector_store %arg9[%c112_31, %c0_32], %34 {strides = array<i32>} : memref<216x512xf32, #tpu.memory_space<vmem>>, vector<8x512xf32>,
    %c0_33 = arith.constant 0 : index
    %c120 = arith.constant 120 : index
    %36 = vector.load %arg8[%c0_33, %c120] : memref<8x768xf32, #tpu.memory_space<vmem>>, vector<8x512xf32>
    %c120_34 = arith.constant 120 : index
    %c0_35 = arith.constant 0 : index
    %37 = vector.load %arg9[%c120_34, %c0_35] : memref<216x512xf32, #tpu.memory_space<vmem>>, vector<8x512xf32>
    tpu.vector_store %arg9[%c120_34, %c0_35], %36 {strides = array<i32>} : memref<216x512xf32, #tpu.memory_space<vmem>>, vector<8x512xf32>,
    %c0_36 = arith.constant 0 : index
    %c121 = arith.constant 121 : index
    %38 = vector.load %arg8[%c0_36, %c121] : memref<8x768xf32, #tpu.memory_space<vmem>>, vector<8x512xf32>
    %c128 = arith.constant 128 : index
    %c0_37 = arith.constant 0 : index
    %39 = vector.load %arg9[%c128, %c0_37] : memref<216x512xf32, #tpu.memory_space<vmem>>, vector<8x512xf32>
    tpu.vector_store %arg9[%c128, %c0_37], %38 {strides = array<i32>} : memref<216x512xf32, #tpu.memory_space<vmem>>, vector<8x512xf32>,
    %c0_38 = arith.constant 0 : index
    %c122 = arith.constant 122 : index
    %40 = vector.load %arg8[%c0_38, %c122] : memref<8x768xf32, #tpu.memory_space<vmem>>, vector<8x512xf32>
    %c136 = arith.constant 136 : index
    %c0_39 = arith.constant 0 : index
    %41 = vector.load %arg9[%c136, %c0_39] : memref<216x512xf32, #tpu.memory_space<vmem>>, vector<8x512xf32>
    tpu.vector_store %arg9[%c136, %c0_39], %40 {strides = array<i32>} : memref<216x512xf32, #tpu.memory_space<vmem>>, vector<8x512xf32>,
    %c0_40 = arith.constant 0 : index
    %c200 = arith.constant 200 : index
    %42 = vector.load %arg8[%c0_40, %c200] : memref<8x768xf32, #tpu.memory_space<vmem>>, vector<8x512xf32>
    %c144 = arith.constant 144 : index
    %c0_41 = arith.constant 0 : index
    %43 = vector.load %arg9[%c144, %c0_41] : memref<216x512xf32, #tpu.memory_space<vmem>>, vector<8x512xf32>
    tpu.vector_store %arg9[%c144, %c0_41], %42 {strides = array<i32>} : memref<216x512xf32, #tpu.memory_space<vmem>>, vector<8x512xf32>,
    %c0_42 = arith.constant 0 : index
    %c201 = arith.constant 201 : index
    %44 = vector.load %arg8[%c0_42, %c201] : memref<8x768xf32, #tpu.memory_space<vmem>>, vector<8x512xf32>
    %c152 = arith.constant 152 : index
    %c0_43 = arith.constant 0 : index
    %45 = vector.load %arg9[%c152, %c0_43] : memref<216x512xf32, #tpu.memory_space<vmem>>, vector<8x512xf32>
    tpu.vector_store %arg9[%c152, %c0_43], %44 {strides = array<i32>} : memref<216x512xf32, #tpu.memory_space<vmem>>, vector<8x512xf32>,
    %c0_44 = arith.constant 0 : index
    %c202 = arith.constant 202 : index
    %46 = vector.load %arg8[%c0_44, %c202] : memref<8x768xf32, #tpu.memory_space<vmem>>, vector<8x512xf32>
    %c160 = arith.constant 160 : index
    %c0_45 = arith.constant 0 : index
    %47 = vector.load %arg9[%c160, %c0_45] : memref<216x512xf32, #tpu.memory_space<vmem>>, vector<8x512xf32>
    tpu.vector_store %arg9[%c160, %c0_45], %46 {strides = array<i32>} : memref<216x512xf32, #tpu.memory_space<vmem>>, vector<8x512xf32>,
    %c0_46 = arith.constant 0 : index
    %c210 = arith.constant 210 : index
    %48 = vector.load %arg8[%c0_46, %c210] : memref<8x768xf32, #tpu.memory_space<vmem>>, vector<8x512xf32>
    %c168 = arith.constant 168 : index
    %c0_47 = arith.constant 0 : index
    %49 = vector.load %arg9[%c168, %c0_47] : memref<216x512xf32, #tpu.memory_space<vmem>>, vector<8x512xf32>
    tpu.vector_store %arg9[%c168, %c0_47], %48 {strides = array<i32>} : memref<216x512xf32, #tpu.memory_space<vmem>>, vector<8x512xf32>,
    %c0_48 = arith.constant 0 : index
    %c211 = arith.constant 211 : index
    %50 = vector.load %arg8[%c0_48, %c211] : memref<8x768xf32, #tpu.memory_space<vmem>>, vector<8x512xf32>
    %c176 = arith.constant 176 : index
    %c0_49 = arith.constant 0 : index
    %51 = vector.load %arg9[%c176, %c0_49] : memref<216x512xf32, #tpu.memory_space<vmem>>, vector<8x512xf32>
    tpu.vector_store %arg9[%c176, %c0_49], %50 {strides = array<i32>} : memref<216x512xf32, #tpu.memory_space<vmem>>, vector<8x512xf32>,
    %c0_50 = arith.constant 0 : index
    %c212 = arith.constant 212 : index
    %52 = vector.load %arg8[%c0_50, %c212] : memref<8x768xf32, #tpu.memory_space<vmem>>, vector<8x512xf32>
    %c184 = arith.constant 184 : index
    %c0_51 = arith.constant 0 : index
    %53 = vector.load %arg9[%c184, %c0_51] : memref<216x512xf32, #tpu.memory_space<vmem>>, vector<8x512xf32>
    tpu.vector_store %arg9[%c184, %c0_51], %52 {strides = array<i32>} : memref<216x512xf32, #tpu.memory_space<vmem>>, vector<8x512xf32>,
    %c0_52 = arith.constant 0 : index
    %c220 = arith.constant 220 : index
    %54 = vector.load %arg8[%c0_52, %c220] : memref<8x768xf32, #tpu.memory_space<vmem>>, vector<8x512xf32>
    %c192 = arith.constant 192 : index
    %c0_53 = arith.constant 0 : index
    %55 = vector.load %arg9[%c192, %c0_53] : memref<216x512xf32, #tpu.memory_space<vmem>>, vector<8x512xf32>
    tpu.vector_store %arg9[%c192, %c0_53], %54 {strides = array<i32>} : memref<216x512xf32, #tpu.memory_space<vmem>>, vector<8x512xf32>,
    %c0_54 = arith.constant 0 : index
    %c221 = arith.constant 221 : index
    %56 = vector.load %arg8[%c0_54, %c221] : memref<8x768xf32, #tpu.memory_space<vmem>>, vector<8x512xf32>
    %c200_55 = arith.constant 200 : index
    %c0_56 = arith.constant 0 : index
    %57 = vector.load %arg9[%c200_55, %c0_56] : memref<216x512xf32, #tpu.memory_space<vmem>>, vector<8x512xf32>
    tpu.vector_store %arg9[%c200_55, %c0_56], %56 {strides = array<i32>} : memref<216x512xf32, #tpu.memory_space<vmem>>, vector<8x512xf32>,
    %c0_57 = arith.constant 0 : index
    %c222 = arith.constant 222 : index
    %58 = vector.load %arg8[%c0_57, %c222] : memref<8x768xf32, #tpu.memory_space<vmem>>, vector<8x512xf32>
    %c208 = arith.constant 208 : index
    %c0_58 = arith.constant 0 : index
    %59 = vector.load %arg9[%c208, %c0_58] : memref<216x512xf32, #tpu.memory_space<vmem>>, vector<8x512xf32>
    tpu.vector_store %arg9[%c208, %c0_58], %58 {strides = array<i32>} : memref<216x512xf32, #tpu.memory_space<vmem>>, vector<8x512xf32>,
    %c0_59 = arith.constant 0 : index
    %c0_60 = arith.constant 0 : index
    %60 = vector.load %arg3[%c0_59, %c0_60] : memref<8x216xf32, #tpu.memory_space<vmem>>, vector<8x216xf32>
    %c0_61 = arith.constant 0 : index
    %c0_62 = arith.constant 0 : index
    %61 = vector.load %arg9[%c0_61, %c0_62] : memref<216x512xf32, #tpu.memory_space<vmem>>, vector<216x512xf32>
    %cst = arith.constant dense<0.000000e+00> : vector<8x512xf32>
    %62 = tpu.matmul %60, %61, %cst {dimension_numbers = #tpu.dot_dimension_numbers<[1], [0], [0], [1], [0, 0, 1, 1], [], []>} : vector<8x216xf32>, vector<216x512xf32>, vector<8x512xf32> -> vector<8x512xf32>
    %c0_63 = arith.constant 0 : index
    %c0_64 = arith.constant 0 : index
    %c0_65 = arith.constant 0 : index
    %63 = vector.load %arg5[%c0_63, %c0_64, %c0_65] : memref<1x8x512xf32, #tpu.memory_space<vmem>>, vector<1x8x512xf32>
    %64 = vector.shape_cast %63 : vector<1x8x512xf32> to vector<8x512xf32>
    %65 = vector.shape_cast %62 : vector<8x512xf32> to vector<1x8x512xf32>
    tpu.vector_store %arg5[%c0_63, %c0_64, %c0_65], %65 {strides = array<i32>} : memref<1x8x512xf32, #tpu.memory_space<vmem>>, vector<1x8x512xf32>,
    %c0_66 = arith.constant 0 : index
    %c0_67 = arith.constant 0 : index
    %66 = vector.load %arg4[%c0_66, %c0_67] : memref<512x1xf32, #tpu.memory_space<vmem>>, vector<512x1xf32>
    %cst_68 = arith.constant dense<0.000000e+00> : vector<8x1xf32>
    %67 = tpu.matmul %62, %66, %cst_68 {dimension_numbers = #tpu.dot_dimension_numbers<[1], [0], [0], [1], [0, 0, 1, 1], [], []>} : vector<8x512xf32>, vector<512x1xf32>, vector<8x1xf32> -> vector<8x1xf32>
    %68 = arith.mulf %62, %62 : vector<8x512xf32>
    %cst_69 = arith.constant dense<0.000000e+00> : vector<8x1xf32>
    %69 = tpu.matmul %68, %66, %cst_69 {dimension_numbers = #tpu.dot_dimension_numbers<[1], [0], [0], [1], [0, 0, 1, 1], [], []>} : vector<8x512xf32>, vector<512x1xf32>, vector<8x1xf32> -> vector<8x1xf32>
    %c0_i32_70 = arith.constant 0 : i32
    %70 = arith.cmpi eq, %arg1, %c0_i32_70 : i32
    %71 = arith.extui %70 : i1 to i32
    %c0_i32_71 = arith.constant 0 : i32
    %72 = arith.cmpi ne, %71, %c0_i32_71 : i32
    scf.if %72 {
      %c0_74 = arith.constant 0 : index
      %c0_75 = arith.constant 0 : index
      %c0_76 = arith.constant 0 : index
      %76 = vector.load %arg6[%c0_74, %c0_75, %c0_76] : memref<1x8x1xf32, #tpu.memory_space<vmem>>, vector<1x8x1xf32>
      %77 = vector.shape_cast %76 : vector<1x8x1xf32> to vector<8x1xf32>
      %78 = vector.shape_cast %67 : vector<8x1xf32> to vector<1x8x1xf32>
      tpu.vector_store %arg6[%c0_74, %c0_75, %c0_76], %78 {strides = array<i32>} : memref<1x8x1xf32, #tpu.memory_space<vmem>>, vector<1x8x1xf32>,
      %c0_77 = arith.constant 0 : index
      %c0_78 = arith.constant 0 : index
      %c0_79 = arith.constant 0 : index
      %79 = vector.load %arg7[%c0_77, %c0_78, %c0_79] : memref<1x8x1xf32, #tpu.memory_space<vmem>>, vector<1x8x1xf32>
      %80 = vector.shape_cast %79 : vector<1x8x1xf32> to vector<8x1xf32>
      %81 = vector.shape_cast %69 : vector<8x1xf32> to vector<1x8x1xf32>
      tpu.vector_store %arg7[%c0_77, %c0_78, %c0_79], %81 {strides = array<i32>} : memref<1x8x1xf32, #tpu.memory_space<vmem>>, vector<1x8x1xf32>,
    } else {
    }
    %c0_i32_72 = arith.constant 0 : i32
    %73 = arith.cmpi sgt, %arg1, %c0_i32_72 : i32
    %74 = arith.extui %73 : i1 to i32
    %c0_i32_73 = arith.constant 0 : i32
    %75 = arith.cmpi ne, %74, %c0_i32_73 : i32
    scf.if %75 {
      %c0_74 = arith.constant 0 : index
      %c0_75 = arith.constant 0 : index
      %c0_76 = arith.constant 0 : index
      %76 = vector.load %arg6[%c0_74, %c0_75, %c0_76] : memref<1x8x1xf32, #tpu.memory_space<vmem>>, vector<1x8x1xf32>
      %77 = vector.shape_cast %76 : vector<1x8x1xf32> to vector<8x1xf32>
      %78 = arith.addf %77, %67 : vector<8x1xf32>
      %c0_77 = arith.constant 0 : index
      %c0_78 = arith.constant 0 : index
      %c0_79 = arith.constant 0 : index
      %79 = vector.load %arg6[%c0_77, %c0_78, %c0_79] : memref<1x8x1xf32, #tpu.memory_space<vmem>>, vector<1x8x1xf32>
      %80 = vector.shape_cast %79 : vector<1x8x1xf32> to vector<8x1xf32>
      %81 = vector.shape_cast %78 : vector<8x1xf32> to vector<1x8x1xf32>
      tpu.vector_store %arg6[%c0_77, %c0_78, %c0_79], %81 {strides = array<i32>} : memref<1x8x1xf32, #tpu.memory_space<vmem>>, vector<1x8x1xf32>,
      %c0_80 = arith.constant 0 : index
      %c0_81 = arith.constant 0 : index
      %c0_82 = arith.constant 0 : index
      %82 = vector.load %arg7[%c0_80, %c0_81, %c0_82] : memref<1x8x1xf32, #tpu.memory_space<vmem>>, vector<1x8x1xf32>
      %83 = vector.shape_cast %82 : vector<1x8x1xf32> to vector<8x1xf32>
      %84 = arith.addf %83, %69 : vector<8x1xf32>
      %c0_83 = arith.constant 0 : index
      %c0_84 = arith.constant 0 : index
      %c0_85 = arith.constant 0 : index
      %85 = vector.load %arg7[%c0_83, %c0_84, %c0_85] : memref<1x8x1xf32, #tpu.memory_space<vmem>>, vector<1x8x1xf32>
      %86 = vector.shape_cast %85 : vector<1x8x1xf32> to vector<8x1xf32>
      %87 = vector.shape_cast %84 : vector<8x1xf32> to vector<1x8x1xf32>
      tpu.vector_store %arg7[%c0_83, %c0_84, %c0_85], %87 {strides = array<i32>} : memref<1x8x1xf32, #tpu.memory_space<vmem>>, vector<1x8x1xf32>,
    } else {
    }
    return
  }
  func.func @transform_1(%arg0: i32, %arg1: i32) -> (i32, i32) {
    %c0_i32 = arith.constant 0 : i32
    %c0_i32_0 = arith.constant 0 : i32
    %c0_i32_1 = arith.constant 0 : i32
    return %c0_i32, %c0_i32_0 : i32, i32
  }
  func.func @transform_2(%arg0: i32, %arg1: i32) -> (i32, i32) {
    %c0_i32 = arith.constant 0 : i32
    %c0_i32_0 = arith.constant 0 : i32
    return %arg1, %c0_i32 : i32, i32
  }
  func.func @transform_3(%arg0: i32, %arg1: i32) -> (i32, i32, i32) {
    %c0_i32 = arith.constant 0 : i32
    %c0_i32_0 = arith.constant 0 : i32
    return %arg0, %c0_i32, %arg1 : i32, i32, i32
  }
  func.func @transform_4(%arg0: i32, %arg1: i32) -> (i32, i32, i32) {
    %c0_i32 = arith.constant 0 : i32
    %c0_i32_0 = arith.constant 0 : i32
    %c0_i32_1 = arith.constant 0 : i32
    return %arg0, %c0_i32, %c0_i32_0 : i32, i32, i32
  }
  func.func @transform_5(%arg0: i32, %arg1: i32) -> (i32, i32, i32) {
    %c0_i32 = arith.constant 0 : i32
    %c0_i32_0 = arith.constant 0 : i32
    %c0_i32_1 = arith.constant 0 : i32
    return %arg0, %c0_i32, %c0_i32_0 : i32, i32, i32
  }
}

module attributes {stable_mosaic.version = 11 : i64} {
  func.func @_norm_relu_kernel(%arg0: i32, %arg1: i32, %arg2: memref<1x8x512xf32, #tpu.memory_space<vmem>>, %arg3: memref<1x8x1xf32, #tpu.memory_space<vmem>>, %arg4: memref<1x8x1xf32, #tpu.memory_space<vmem>>, %arg5: memref<1x8x512xf32, #tpu.memory_space<vmem>>) attributes {dimension_semantics = [#tpu.dimension_semantics<parallel>, #tpu.dimension_semantics<parallel>], iteration_bounds = array<i64: 2, 2>, scalar_prefetch = 0 : i64, scratch_operands = 0 : i64, tpu.core_type = #tpu.core_type<tc>, window_params = [{transform_indices = @transform_0, window_bounds = array<i64: 1, 8, 512>}, {transform_indices = @transform_1, window_bounds = array<i64: 1, 8, 1>}, {transform_indices = @transform_2, window_bounds = array<i64: 1, 8, 1>}, {transform_indices = @transform_3, window_bounds = array<i64: 1, 8, 512>}]} {
    %c0 = arith.constant 0 : index
    %c0_0 = arith.constant 0 : index
    %c0_1 = arith.constant 0 : index
    %0 = vector.load %arg2[%c0, %c0_0, %c0_1] : memref<1x8x512xf32, #tpu.memory_space<vmem>>, vector<1x8x512xf32>
    %1 = vector.shape_cast %0 : vector<1x8x512xf32> to vector<8x512xf32>
    %c0_2 = arith.constant 0 : index
    %c0_3 = arith.constant 0 : index
    %c0_4 = arith.constant 0 : index
    %2 = vector.load %arg3[%c0_2, %c0_3, %c0_4] : memref<1x8x1xf32, #tpu.memory_space<vmem>>, vector<1x8x1xf32>
    %3 = vector.shape_cast %2 : vector<1x8x1xf32> to vector<8x1xf32>
    %4 = vector.broadcast %3 : vector<8x1xf32> to vector<8x512xf32>
    %5 = arith.mulf %1, %4 : vector<8x512xf32>
    %c0_5 = arith.constant 0 : index
    %c0_6 = arith.constant 0 : index
    %c0_7 = arith.constant 0 : index
    %6 = vector.load %arg4[%c0_5, %c0_6, %c0_7] : memref<1x8x1xf32, #tpu.memory_space<vmem>>, vector<1x8x1xf32>
    %7 = vector.shape_cast %6 : vector<1x8x1xf32> to vector<8x1xf32>
    %8 = vector.broadcast %7 : vector<8x1xf32> to vector<8x512xf32>
    %9 = arith.addf %5, %8 : vector<8x512xf32>
    %cst = arith.constant 0.000000e+00 : f32
    %10 = vector.broadcast %cst : f32 to vector<8x512xf32>
    %11 = arith.maximumf %9, %10 : vector<8x512xf32>
    %c0_8 = arith.constant 0 : index
    %c0_9 = arith.constant 0 : index
    %c0_10 = arith.constant 0 : index
    %12 = vector.load %arg5[%c0_8, %c0_9, %c0_10] : memref<1x8x512xf32, #tpu.memory_space<vmem>>, vector<1x8x512xf32>
    %13 = vector.shape_cast %12 : vector<1x8x512xf32> to vector<8x512xf32>
    %14 = vector.shape_cast %11 : vector<8x512xf32> to vector<1x8x512xf32>
    tpu.vector_store %arg5[%c0_8, %c0_9, %c0_10], %14 {strides = array<i32>} : memref<1x8x512xf32, #tpu.memory_space<vmem>>, vector<1x8x512xf32>,
    return
  }
  func.func @transform_0(%arg0: i32, %arg1: i32) -> (i32, i32, i32) {
    %c0_i32 = arith.constant 0 : i32
    %c0_i32_0 = arith.constant 0 : i32
    return %arg0, %c0_i32, %arg1 : i32, i32, i32
  }
  func.func @transform_1(%arg0: i32, %arg1: i32) -> (i32, i32, i32) {
    %c0_i32 = arith.constant 0 : i32
    %c0_i32_0 = arith.constant 0 : i32
    %c0_i32_1 = arith.constant 0 : i32
    return %arg0, %c0_i32, %c0_i32_0 : i32, i32, i32
  }
  func.func @transform_2(%arg0: i32, %arg1: i32) -> (i32, i32, i32) {
    %c0_i32 = arith.constant 0 : i32
    %c0_i32_0 = arith.constant 0 : i32
    %c0_i32_1 = arith.constant 0 : i32
    return %arg0, %c0_i32, %c0_i32_0 : i32, i32, i32
  }
  func.func @transform_3(%arg0: i32, %arg1: i32) -> (i32, i32, i32) {
    %c0_i32 = arith.constant 0 : i32
    %c0_i32_0 = arith.constant 0 : i32
    return %arg0, %c0_i32, %arg1 : i32, i32, i32
  }
}

</mosaic_0001>

<bundles_post_ra>
// kernel: decoder_conv.3
= control target key start
LH: loop header
LB: loop body
LE: loop exit
PB: predicated region body
PF: predicated region fallthrough
CT: control target
= control target key end

     0   :  { %s508_s12 = smov 0   ;;  %s510_s13 = smov 0   ;;  %s568_s0 = inlined_call_operand.vmem [shape: f32[2,8,1024], index: 0, kind: input, shape index: {}, may-alias: {0,3}]   ;;  %s569_s1 = inlined_call_operand.vmem [shape: f32[2,8,1], index: 1, kind: input, shape index: {}]   ;;  %s570_s2 = inlined_call_operand.vmem [shape: f32[2,8,1], index: 2, kind: input, shape index: {}]   ;;  %s571_s3 = inlined_call_operand.vmem [shape: f32[2,8,1024], index: 3, kind: output, shape index: {}, may-alias: {0,3}]  }
   0x1   :  { %s512_s14 = smov 0   ;;  %s514_s15 = smov 0  }
   0x2   :  { %s516_s16 = smov 0  }
   0x3 LB: > { %s22_s17 = sadd.s32 1, %s477_s14  ;;  %s25_s18 = sadd.s32 1, %s481_s15  ;;  %s485_s16 = sphi %s516_s16, %s13_s16   ;;  %s481_s15 = sphi %s514_s15, %s575_s15   ;;  %s477_s14 = sphi %s512_s14, %s574_s14   ;;  %s473_s13 = sphi %s510_s13, %s573_s13   ;;  %s469_s12 = sphi %s508_s12, %s572_s12  }
   0x4   : > { %p23_p0 = scmp.ge.s32.totalorder %s22_s17, 2  ;;  %p394_p1 = scmp.ge.s32.totalorder %s485_s16, 1 }
   0x5   : > { %p176_p2 = scmp.lt.s32.totalorder %s485_s16, 5 }
   0x6   : > { %s577_s17 = smov (%p23_p0, %s22_s17), 0  ;;  %s579_s18 = smov (!%p23_p0, %s25_s18), %s481_s15 }
   0x7   : > { %p177_p3 = pnand %p394_p1, %p176_p2  ;;  %p27_p4 = scmp.ge.s32.totalorder %s579_s18, 2 }
   0x8   : > { %p217_p5 = scmp.lt.s32.totalorder (!%p177_p3), %s473_s13, 1  ;;  %v487_v0 = vmov (!%p177_p3), 0   ;;  %s395_s26 = sshll.u32 (!%p177_p3), %s469_s12, 2 }
   0x9   : > { %s581_s18 = smov (%p27_p4, %s579_s18), 0  ;;  %180 = sbr.rel (%p177_p3) target bundleno = 158 (0x9e), region = 32 }
   0xa   : > { %446 = vset.pattern.permute.xlu0 (!%p177_p3), %v487_v0  ;;  %p219_p6 = scmp.lt.s32.totalorder (!%p177_p3), %s395_s26, 7 }
  0x10   : > { %s583_s13 = smov (!%p217_p5, %s473_s13), 1  ;;  %s585_s26 = smov (!%p219_p6, %s395_s26), 7 }
  0x11   : > { %s396_s19 = sshll.u32 %s583_s13, 3 }
  0x12   : > { %s229_s22 = scalar_lea.vmem %s569_s1, %s396_s19  ;;  %s233_s25 = scalar_lea.vmem %s570_s2, %s396_s19 }
  0x13   : > { %v248_v1 = vld [vmem:[%s229_s22] sm:$0xff]  ;;  %s222_s27 = sadd.s32 %s396_s19, %s585_s26 }
  0x14   : > { %251 = vperm.xlu0 %446, %v248_v1   ;;  %v258_v2 = vld [vmem:[%s233_s25] sm:$0xff]  ;;  %s397_s28 = sshll.u32 %s222_s27, 3 }
  0x15   : > { %s224_s4 = scalar_lea.vmem %s568_s0, %s397_s28  ;;  %s242_s7 = scalar_lea.vmem %s571_s3, %s397_s28 }
  0x16   : > { %v244_v3 = vld [vmem:[%s224_s4] sm:$0xff]  ;;  %v245_v4 = vld [vmem:[%s224_s4 + $0x8] sm:$0xff]  ;;  %v246_v5 = vld [vmem:[%s224_s4 + $0x10] sm:$0xff] }
  0x17   : > { %v247_v6 = vld [vmem:[%s224_s4 + $0x18] sm:$0xff] }
  0x18   : > { %261 = vperm.xlu0 %446, %v258_v2  }
  0x93   : > { %v252_v7 = vpop.permute.xlu0 %251 }
  0x94   : > { %v254_v8 = vmul.f32 %v252_v7, %v244_v3  ;;  %v255_v9 = vmul.f32 %v252_v7, %v245_v4  ;;  %v256_v10 = vmul.f32 %v252_v7, %v246_v5  ;;  %v257_v11 = vmul.f32 %v252_v7, %v247_v6 }
  0x97   : > { %v262_v12 = vpop.permute.xlu0 %261 }
  0x98   : > { %v264_v13 = vadd.f32 %v262_v12, %v254_v8  ;;  %v265_v14 = vadd.f32 %v262_v12, %v255_v9  ;;  %v266_v15 = vadd.f32 %v262_v12, %v256_v10  ;;  %v267_v16 = vadd.f32 %v262_v12, %v257_v11 }
  0x9a   : > { %v268_v17 = vmax.f32 %v264_v13, 0.0  ;;  %v269_v18 = vmax.f32 %v265_v14, 0.0  ;;  %v270_v19 = vmax.f32 %v266_v15, 0.0  ;;  %v271_v20 = vmax.f32 %v267_v16, 0.0 }
  0x9c   : > { %272 = vst [vmem:[%s242_s7] sm:$0xff] %v268_v17  ;;  %273 = vst [vmem:[%s242_s7 + $0x8] sm:$0xff] %v269_v18 }
  0x9d   : > { %274 = vst [vmem:[%s242_s7 + $0x10] sm:$0xff] %v270_v19  ;;  %275 = vst [vmem:[%s242_s7 + $0x18] sm:$0xff] %v271_v20 }
  0x9e PF: > { %s13_s16 = sadd.s32 1, %s485_s16   ;;  %s572_s12 = smov %s477_s14 }
  0x9f   : > { %p10_p7 = scmp.ge.s32.totalorder %s13_s16, 6   ;;  %s573_s13 = smov %s481_s15 }
  0xa0   : > { %s574_s14 = smov %s577_s17  ;;  %s575_s15 = smov %s581_s18 }
  0xa1   :  { %12 = sbr.rel (!%p10_p7) target bundleno = 3 (0x3), region = 68 }

// kernel: decoder_conv.2
= control target key start
LH: loop header
LB: loop body
LE: loop exit
PB: predicated region body
PF: predicated region fallthrough
CT: control target
= control target key end

     0   :  { %s2771_s18 = smov 0   ;;  %s2773_s19 = smov 0   ;;  %s3257_s0 = inlined_call_operand.vmem [shape: f32[2,8,1300], index: 0, kind: input, shape index: {}]   ;;  %s3258_s1 = inlined_call_operand.vmem [shape: f32[8,216], index: 1, kind: input, shape index: {}]   ;;  %s3259_s2 = inlined_call_operand.vmem [shape: f32[1024,1], index: 2, kind: input, shape index: {}]   ;;  %s3260_s3 = inlined_call_operand.vmem [shape: f32[2,8,1024], index: 3, kind: output, shape index: {0}]   ;;  %s3261_s4 = inlined_call_operand.vmem [shape: f32[2,8,1], index: 4, kind: output, shape index: {1}]   ;;  %s3262_s5 = inlined_call_operand.vmem [shape: f32[2,8,1], index: 5, kind: output, shape index: {2}]  }
   0x1   :  { %3263 = sst [smem:[#allocation8_spill]] %s3259_s2  ;;  %s2775_s20 = smov 0  }
   0x2   :  { %s2777_s21 = smov 0   ;;  %s2779_s22 = smov 0  }
   0x3 LB: > { %s25_s23 = sadd.s32 1, %s2705_s20  ;;  %s28_s24 = sadd.s32 1, %s2709_s21  ;;  %s2713_s22 = sphi %s2779_s22, %s16_s22   ;;  %s2709_s21 = sphi %s2777_s21, %s3270_s21   ;;  %s2705_s20 = sphi %s2775_s20, %s3269_s20   ;;  %s2701_s19 = sphi %s2773_s19, %s3268_s19   ;;  %s2697_s18 = sphi %s2771_s18, %s3267_s18  }
   0x4   : > { %p26_p0 = scmp.ge.s32.totalorder %s25_s23, 2  ;;  %p1968_p1 = scmp.ge.s32.totalorder %s2713_s22, 1 }
   0x5   : > { %p183_p2 = scmp.lt.s32.totalorder %s2713_s22, 5 }
   0x6   : > { %s3272_s23 = smov (%p26_p0, %s25_s23), 0  ;;  %s3274_s24 = smov (!%p26_p0, %s28_s24), %s2709_s21 }
   0x7   : > { %p184_p3 = pnand %p1968_p1, %p183_p2  ;;  %p30_p4 = scmp.ge.s32.totalorder %s3274_s24, 2 }
   0x8   : > { %s1969_s25 = sshll.u32 (!%p184_p3), %s2697_s18, 6  ;;  %s1971_s26 = sshll.u32 (!%p184_p3), %s2697_s18, 2 }
   0x9   : > { %s3276_s24 = smov (%p30_p4, %s3274_s24), 0  ;;  %187 = sbr.rel (%p184_p3) target bundleno = 778 (0x30a), region = 28 }
   0xa   : > { %3264 = sst [smem:[#allocation7_spill]] %s3276_s24  ;;  %p222_p5 = scmp.lt.s32.totalorder (!%p184_p3), %s1969_s25, 127 }
   0xb   : > { %p228_p6 = scmp.lt.s32.totalorder (!%p184_p3), %s2701_s19, 1  ;;  %p230_p7 = scmp.lt.s32.totalorder (!%p184_p3), %s1971_s26, 7 }
   0xc   : > { %s1976_s27 = sshll.u32 (!%p184_p3), %s2697_s18, 9  ;;  %s3265_s2 = sld [smem:[#allocation8_spill]] (!%p184_p3) }
   0xd   : > { %s246_s30 = sshra.s32 (!%p184_p3), %s1976_s27, 7  ;;  %s248_s17 = smul.u32 (!%p184_p3), 11, %s2701_s19 }
  0x10   : > { %s3278_s25 = smov (!%p222_p5, %s1969_s25), 127  ;;  %s3280_s26 = smov (!%p230_p7, %s1971_s26), 7 }
  0x11   : > { %s229_s28 = scalar_select %p228_p6, %s2701_s19, 1 }
  0x12   : > { %s1970_s29 = sshll.u32 %s3278_s25, 3 }
  0x13   : > { %s2813_s8 = scalar_lea.vmem %s3265_s2, %s1970_s29  ;;  %s1972_s9 = sshll.u32 %s229_s28, 3 }
  0x14   : > { %s2818_s12 = scalar_lea.vmem %s3261_s4, %s1972_s9  ;;  %s2823_s15 = scalar_lea.vmem %s3262_s5, %s1972_s9 }
  0x15   : > { %s233_s16 = sadd.s32 %s1972_s9, %s3280_s26  ;;  %s249_s28 = sadd.s32 %s248_s17, %s246_s30 }
  0x16   : > { %s1973_s25 = sshll.u32 %s233_s16, 3  ;;  %s1977_s6 = sshll.u32 %s249_s28, 3 }
  0x17   : > { %s2829_s29 = scalar_lea.vmem %s3260_s3, %s1973_s25  ;;  %s251_s10 = scalar_lea.vmem %s3257_s0, %s1977_s6 }
  0x18   : > { %v2834_v0 = vld [vmem:[%s251_s10] sm:$0xff]  ;;  %v2836_v1 = vld [vmem:[%s251_s10 + $0x8] sm:$0xff]  ;;  %v2838_v2 = vld [vmem:[%s251_s10 + $0x10] sm:$0xff] }
  0x19   : > { %v2840_v3 = vld [vmem:[%s251_s10 + $0x18] sm:$0xff]  ;;  %v2842_v4 = vld [vmem:[%s251_s10 + $0x20] sm:$0xff]  ;;  %v2844_v5 = vld [vmem:[%s251_s10 + $0x28] sm:$0xff] }
  0x1a   : > { %303 = vsyncadd [#allocation4], 768  ;;  %v2848_v6 = vpack.i.bf16 %v2838_v2, %v2836_v1 }
  0x1b   : > { %2693 = dma.done.wait [#allocation4], 768 }
  0x1c   : > { %2694 = vsyncadd [#allocation4], 4294966528  ;;  %s2715_s2 = smov 127   ;;  %v2854_v7 = vpack.i.bf16 %v2842_v4, %v2840_v3  ;;  %s2716_s19 = smov 126   ;;  %v2905_v8 = vpack.i.bf16 %v2840_v3, %v2838_v2  ;;  %v2912_v9 = vpack.i.bf16 %v2844_v5, %v2842_v4  ;;  %vm336_vm0 = vcmask 1039360  }
  0x1d   : > { %326 = vrot.lane.b32.xlu1 %v2834_v0, %s2715_s2  ;;  %2424 = vrot.lane.b32.xlu0 %v2848_v6, %s2715_s2  ;;  %s2717_s24 = smov 118   ;;  %s2718_s26 = smov 117   ;;  %vm369_vm1 = vcmask 1031168   ;;  %vm402_vm2 = vcmask 965632   ;;  %vm435_vm3 = vcmask 957440   ;;  %vm468_vm4 = vcmask 949248  }
  0x1e   : > { %s2719_s30 = smov 116   ;;  %s2720_s9 = smov 108   ;;  %vm1284_vm5 = vcmask 719872   ;;  %vm501_vm6 = vcmask 883712   ;;  %vm534_vm7 = vcmask 875520   ;;  %vm567_vm8 = vcmask 867328  }
  0x1f   : > { %s2721_s11 = smov 107   ;;  %s2722_s13 = smov 106   ;;  %vm600_vm9 = vcmask 228352   ;;  %vm633_vm10 = vcmask 220160   ;;  %vm666_vm11 = vcmask 211968   ;;  %vm699_vm12 = vcmask 146432  }
  0x20   : > { %s2723_s14 = smov 28   ;;  %s2724_s16 = smov 27   ;;  %vm732_vm13 = vcmask 138240   ;;  %vm765_vm14 = vcmask 130048   ;;  %vm798_vm15 = vcmask 64512  }
  0x21   : > { %2434 = vrot.lane.b32.xlu1 %v2848_v6, %s2716_s19  ;;  %2429 = vrot.lane.b32.xlu0 %v2854_v7, %s2715_s2  ;;  %s2725_s17 = smov 26   ;;  %s2726_s25 = smov 18  }
  0x22   : > { %s2727_s27 = smov 17   ;;  %s2728_s28 = smov 16  }
  0x23   : > { %s2729_s6 = smov 8   ;;  %s2730_s7 = smov 7  }
  0x24   : > { %s2731_s10 = smov 6   ;;  %s2732_s2 = smov 56  }
  0x25   : > { %2444 = vrot.lane.b32.xlu1 %v2848_v6, %s2717_s24  ;;  %2439 = vrot.lane.b32.xlu0 %v2854_v7, %s2716_s19  ;;  %p1980_p8 = scmp.ne.s32.totalorder %s2697_s18, 0 }
  0x29   : > { %359 = vrot.lane.b32.xlu1 %v2834_v0, %s2716_s19  ;;  %2449 = vrot.lane.b32.xlu0 %v2854_v7, %s2717_s24  ;;  %s2733_s19 = smov 55  }
  0x2d   : > { %2454 = vrot.lane.b32.xlu1 %v2848_v6, %s2718_s26  ;;  %392 = vrot.lane.b32.xlu0 %v2834_v0, %s2717_s24  ;;  %s2734_s24 = smov 54  }
  0x31   : > { %2464 = vrot.lane.b32.xlu1 %v2848_v6, %s2719_s30  ;;  %2459 = vrot.lane.b32.xlu0 %v2854_v7, %s2718_s26 }
  0x35   : > { %425 = vrot.lane.b32.xlu1 %v2834_v0, %s2718_s26  ;;  %2469 = vrot.lane.b32.xlu0 %v2854_v7, %s2719_s30  ;;  %s2735_s26 = smov 46  }
  0x39   : > { %2474 = vrot.lane.b32.xlu1 %v2848_v6, %s2720_s9  ;;  %458 = vrot.lane.b32.xlu0 %v2834_v0, %s2719_s30  ;;  %s2736_s30 = smov 45  }
  0x3d   : > { %2484 = vrot.lane.b32.xlu1 %v2848_v6, %s2721_s11  ;;  %2479 = vrot.lane.b32.xlu0 %v2854_v7, %s2720_s9 }
  0x41   : > { %491 = vrot.lane.b32.xlu1 %v2834_v0, %s2720_s9  ;;  %2489 = vrot.lane.b32.xlu0 %v2854_v7, %s2721_s11  ;;  %s2737_s9 = smov 44  }
  0x45   : > { %2494 = vrot.lane.b32.xlu1 %v2848_v6, %s2722_s13  ;;  %524 = vrot.lane.b32.xlu0 %v2834_v0, %s2721_s11  ;;  %s2738_s11 = smov 36  }
  0x49   : > { %2504 = vrot.lane.b32.xlu1 %v2848_v6, %s2723_s14  ;;  %2499 = vrot.lane.b32.xlu0 %v2854_v7, %s2722_s13 }
  0x4d   : > { %557 = vrot.lane.b32.xlu1 %v2834_v0, %s2722_s13  ;;  %2509 = vrot.lane.b32.xlu0 %v2854_v7, %s2723_s14  ;;  %s2739_s13 = smov 35  }
  0x51   : > { %2514 = vrot.lane.b32.xlu1 %v2848_v6, %s2724_s16  ;;  %590 = vrot.lane.b32.xlu0 %v2834_v0, %s2723_s14 }
  0x55   : > { %2524 = vrot.lane.b32.xlu1 %v2848_v6, %s2725_s17  ;;  %2519 = vrot.lane.b32.xlu0 %v2854_v7, %s2724_s16 }
  0x59   : > { %623 = vrot.lane.b32.xlu1 %v2834_v0, %s2724_s16  ;;  %2529 = vrot.lane.b32.xlu0 %v2854_v7, %s2725_s17 }
  0x5d   : > { %2534 = vrot.lane.b32.xlu1 %v2848_v6, %s2726_s25  ;;  %656 = vrot.lane.b32.xlu0 %v2834_v0, %s2725_s17  ;;  %s2740_s17 = smov 34  }
  0x61   : > { %2544 = vrot.lane.b32.xlu1 %v2848_v6, %s2727_s27  ;;  %2539 = vrot.lane.b32.xlu0 %v2854_v7, %s2726_s25 }
  0x65   : > { %689 = vrot.lane.b32.xlu1 %v2834_v0, %s2726_s25  ;;  %2549 = vrot.lane.b32.xlu0 %v2854_v7, %s2727_s27 }
  0x69   : > { %2554 = vrot.lane.b32.xlu1 %v2848_v6, %s2728_s28  ;;  %722 = vrot.lane.b32.xlu0 %v2834_v0, %s2727_s27 }
  0x6d   : > { %2564 = vrot.lane.b32.xlu1 %v2848_v6, %s2729_s6  ;;  %2559 = vrot.lane.b32.xlu0 %v2854_v7, %s2728_s28 }
  0x71   : > { %755 = vrot.lane.b32.xlu1 %v2834_v0, %s2728_s28  ;;  %2569 = vrot.lane.b32.xlu0 %v2854_v7, %s2729_s6 }
  0x75   : > { %2574 = vrot.lane.b32.xlu1 %v2848_v6, %s2730_s7  ;;  %788 = vrot.lane.b32.xlu0 %v2834_v0, %s2729_s6 }
  0x79   : > { %2584 = vrot.lane.b32.xlu1 %v2848_v6, %s2731_s10  ;;  %2579 = vrot.lane.b32.xlu0 %v2854_v7, %s2730_s7 }
  0x7d   : > { %821 = vrot.lane.b32.xlu1 %v2834_v0, %s2730_s7  ;;  %2589 = vrot.lane.b32.xlu0 %v2854_v7, %s2731_s10 }
  0x81   : > { %2594 = vrot.lane.b32.xlu1 %v2905_v8, %s2732_s2  ;;  %854 = vrot.lane.b32.xlu0 %v2834_v0, %s2731_s10 }
  0x85   : > { %2604 = vrot.lane.b32.xlu1 %v2905_v8, %s2733_s19  ;;  %2599 = vrot.lane.b32.xlu0 %v2912_v9, %s2732_s2 }
  0x89   : > { %887 = vrot.lane.b32.xlu1 %v2836_v1, %s2732_s2  ;;  %2609 = vrot.lane.b32.xlu0 %v2912_v9, %s2733_s19 }
  0x8d   : > { %2614 = vrot.lane.b32.xlu1 %v2905_v8, %s2734_s24  ;;  %920 = vrot.lane.b32.xlu0 %v2836_v1, %s2733_s19 }
  0x8f   : > { %v327_v10 = vpop.permute.xlu1 %326  ;;  %v2425_v11 = vpop.permute.xlu0 %2424 }
  0x90   : > { %v2427_v12 = vunpack.i.h.bf16 %v2425_v11  ;;  %v2426_v13 = vunpack.i.l.bf16 %v2425_v11 }
  0x91   : > { %2624 = vrot.lane.b32.xlu1 %v2905_v8, %s2735_s26  ;;  %2619 = vrot.lane.b32.xlu0 %v2912_v9, %s2734_s24 }
  0x92   : > { %v338_v15 = vsel %vm336_vm0, %v2426_v13, %v2427_v12  ;;  %v337_v16 = vsel %vm336_vm0, %v327_v10, %v2426_v13 }
  0x93   : > { %v2435_v14 = vpop.permute.xlu1 %2434  ;;  %v2430_v17 = vpop.permute.xlu0 %2429  ;;  %v2125_v18 = vpack.c.bf16 %v338_v15, %v2836_v1  ;;  %v2127_v19 = vpack.c.bf16 %v337_v16, %v2834_v0 }
  0x94   : > { %v2432_v20 = vunpack.i.h.bf16 %v2430_v17  ;;  %v2431_v21 = vunpack.i.l.bf16 %v2430_v17  ;;  %v2437_v22 = vunpack.i.h.bf16 %v2435_v14  ;;  %v2436_v23 = vunpack.i.l.bf16 %v2435_v14 }
  0x95   : > { %953 = vrot.lane.b32.xlu1 %v2836_v1, %s2734_s24  ;;  %2629 = vrot.lane.b32.xlu0 %v2912_v9, %s2735_s26 }
  0x96   : > { %2126 = vmatprep.subr.bf16.mxu0 %v2125_v18  ;;  %v340_v25 = vsel %vm336_vm0, %v2431_v21, %v2432_v20  ;;  %v339_v26 = vsel %vm336_vm0, %v2427_v12, %v2431_v21  ;;  %v371_v32 = vsel %vm369_vm1, %v2436_v23, %v2437_v22  ;;  %v1175_v18 = vld [vmem:[%s3258_s1 + $0x8] sm:$0xff]  ;;  %vm831_vm0 = vcmask 56320  }
  0x97   : > { %v2445_v24 = vpop.permute.xlu1 %2444  ;;  %2128 = vmatpush1.bf16.msra.mxu0 %v2127_v19  ;;  %v2440_v29 = vpop.permute.xlu0 %2439  ;;  %v2177_v30 = vpack.c.bf16 %v340_v25, %v2840_v3  ;;  %v2179_v31 = vpack.c.bf16 %v339_v26, %v2838_v2  ;;  %1978 = vmatprep.mubr.msk.f32.mxu0 %vm1284_vm5, %v1175_v18 }
  0x98   : > { %v2447_v27 = vunpack.i.h.bf16 %v2445_v24  ;;  %v2446_v28 = vunpack.i.l.bf16 %v2445_v24  ;;  %v2442_v34 = vunpack.i.h.bf16 %v2440_v29  ;;  %v2441_v35 = vunpack.i.l.bf16 %v2440_v29  ;;  %1979 = vmatprep.mubr.msk.f32.mxu1 %vm1284_vm5, %v1175_v18 }
  0x99   : > { %2634 = vrot.lane.b32.xlu1 %v2905_v8, %s2736_s30  ;;  %986 = vrot.lane.b32.xlu0 %v2836_v1, %s2735_s26  ;;  %vm996_vm5 = vcmask 375808  }
  0x9a   : > { %2178 = vmatprep.subr.bf16.mxu1 %v2177_v30  ;;  %v404_v33 = vsel %vm402_vm2, %v2446_v28, %v2447_v27  ;;  %v373_v42 = vsel %vm369_vm1, %v2441_v35, %v2442_v34  ;;  %v372_v44 = vsel %vm369_vm1, %v2437_v22, %v2441_v35 }
  0x9b   : > { %v360_v36 = vpop.permute.xlu1 %359  ;;  %2180 = vmatpush1.bf16.msra.mxu1 %v2179_v31  ;;  %v2129_v37 = vpack.c.bf16 %v404_v33, %v371_v32  ;;  %v2450_v38 = vpop.permute.xlu0 %2449 }
  0x9c   : > { %v2452_v39 = vunpack.i.h.bf16 %v2450_v38  ;;  %v2451_v40 = vunpack.i.l.bf16 %v2450_v38  ;;  %v370_v49 = vsel %vm369_vm1, %v360_v36, %v2436_v23  ;;  %vm864_vm1 = vcmask 48128  }
  0x9d   : > { %2644 = vrot.lane.b32.xlu1 %v2905_v8, %s2737_s9  ;;  %2130 = vmatprep.subr.bf16.mxu0 %v2129_v37 }
  0x9e   : > { %2639 = vrot.lane.b32.xlu0 %v2912_v9, %s2736_s30  ;;  %v406_v43 = vsel %vm402_vm2, %v2451_v40, %v2452_v39  ;;  %v405_v45 = vsel %vm402_vm2, %v2447_v27, %v2451_v40 }
  0x9f   : > { %v2455_v41 = vpop.permute.xlu1 %2454  ;;  %v393_v46 = vpop.permute.xlu0 %392  ;;  %v2181_v47 = vpack.c.bf16 %v406_v43, %v373_v42  ;;  %v2183_v48 = vpack.c.bf16 %v405_v45, %v372_v44 }
  0xa0   : > { %v403_v50 = vsel %vm402_vm2, %v393_v46, %v2446_v28  ;;  %v2457_v51 = vunpack.i.h.bf16 %v2455_v41  ;;  %v2456_v52 = vunpack.i.l.bf16 %v2455_v41  ;;  %vm897_vm2 = vcmask 457728  }
  0xa1   : > { %1019 = vrot.lane.b32.xlu1 %v2836_v1, %s2736_s30  ;;  %v2131_v53 = vpack.c.bf16 %v403_v50, %v370_v49  ;;  %2182 = vmatprep.subr.bf16.mxu1 %v2181_v47 }
  0xa2   : > { %2649 = vrot.lane.b32.xlu0 %v2912_v9, %s2737_s9  ;;  %2184 = vmatpush1.bf16.msra.mxu1 %v2183_v48  ;;  %v437_v58 = vsel %vm435_vm3, %v2456_v52, %v2457_v51 }
  0xa3   : > { %v2465_v54 = vpop.permute.xlu1 %2464  ;;  %v2460_v57 = vpop.permute.xlu0 %2459  ;;  %2132 = vmatpush1.bf16.msra.mxu0 %v2131_v53 }
  0xa4   : > { %v2467_v55 = vunpack.i.h.bf16 %v2465_v54  ;;  %v2466_v56 = vunpack.i.l.bf16 %v2465_v54  ;;  %v2462_v60 = vunpack.i.h.bf16 %v2460_v57  ;;  %v2461_v61 = vunpack.i.l.bf16 %v2460_v57 }
  0xa5   : > { %2654 = vrot.lane.b32.xlu1 %v2905_v8, %s2738_s11 }
  0xa6   : > { %1052 = vrot.lane.b32.xlu0 %v2836_v1, %s2737_s9  ;;  %v470_v59 = vsel %vm468_vm4, %v2466_v56, %v2467_v55  ;;  %v439_v11 = vsel %vm435_vm3, %v2461_v61, %v2462_v60  ;;  %v438_v13 = vsel %vm435_vm3, %v2457_v51, %v2461_v61 }
  0xa7   : > { %v426_v62 = vpop.permute.xlu1 %425  ;;  %v2133_v63 = vpack.c.bf16 %v470_v59, %v437_v58  ;;  %v2470_v0 = vpop.permute.xlu0 %2469 }
  0xa8   : > { %v2472_v6 = vunpack.i.h.bf16 %v2470_v0  ;;  %v2471_v7 = vunpack.i.l.bf16 %v2470_v0 }
  0xa9   : > { %2664 = vrot.lane.b32.xlu1 %v2905_v8, %s2739_s13  ;;  %2134 = vmatprep.subr.bf16.mxu0 %v2133_v63  ;;  %v436_v8 = vsel %vm435_vm3, %v426_v62, %v2456_v52  ;;  %vm930_vm3 = vcmask 449536  }
  0xaa   : > { %2659 = vrot.lane.b32.xlu0 %v2912_v9, %s2738_s11  ;;  %v472_v12 = vsel %vm468_vm4, %v2471_v7, %v2472_v6  ;;  %v471_v14 = vsel %vm468_vm4, %v2467_v55, %v2471_v7 }
  0xab   : > { %v2475_v10 = vpop.permute.xlu1 %2474  ;;  %v459_v15 = vpop.permute.xlu0 %458  ;;  %v2185_v16 = vpack.c.bf16 %v472_v12, %v439_v11  ;;  %v2187_v17 = vpack.c.bf16 %v471_v14, %v438_v13 }
  0xac   : > { %v469_v19 = vsel %vm468_vm4, %v459_v15, %v2466_v56  ;;  %v2477_v20 = vunpack.i.h.bf16 %v2475_v10  ;;  %v2476_v21 = vunpack.i.l.bf16 %v2475_v10  ;;  %vm963_vm4 = vcmask 441344  }
  0xad   : > { %1085 = vrot.lane.b32.xlu1 %v2836_v1, %s2738_s11  ;;  %v2135_v22 = vpack.c.bf16 %v469_v19, %v436_v8  ;;  %2186 = vmatprep.subr.bf16.mxu1 %v2185_v16 }
  0xae   : > { %2669 = vrot.lane.b32.xlu0 %v2912_v9, %s2739_s13  ;;  %2188 = vmatpush1.bf16.msra.mxu1 %v2187_v17  ;;  %v503_v27 = vsel %vm501_vm6, %v2476_v21, %v2477_v20 }
  0xaf   : > { %v2485_v23 = vpop.permute.xlu1 %2484  ;;  %v2480_v26 = vpop.permute.xlu0 %2479  ;;  %2136 = vmatpush1.bf16.msra.mxu0 %v2135_v22 }
  0xb0   : > { %v2487_v24 = vunpack.i.h.bf16 %v2485_v23  ;;  %v2486_v25 = vunpack.i.l.bf16 %v2485_v23  ;;  %v2482_v28 = vunpack.i.h.bf16 %v2480_v26  ;;  %v2481_v29 = vunpack.i.l.bf16 %v2480_v26 }
  0xb1   : > { %1153 = vrot.lane.b32.xlu1 %v2838_v2, %s2740_s17 }
  0xb2   : > { %1118 = vrot.lane.b32.xlu0 %v2836_v1, %s2739_s13  ;;  %v536_v9 = vsel %vm534_vm7, %v2486_v25, %v2487_v24  ;;  %v505_v35 = vsel %vm501_vm6, %v2481_v29, %v2482_v28  ;;  %v504_v37 = vsel %vm501_vm6, %v2477_v20, %v2481_v29 }
  0xb3   : > { %v492_v30 = vpop.permute.xlu1 %491  ;;  %v2137_v31 = vpack.c.bf16 %v536_v9, %v503_v27  ;;  %v2490_v32 = vpop.permute.xlu0 %2489 }
  0xb4   : > { %v2492_v33 = vunpack.i.h.bf16 %v2490_v32  ;;  %v2491_v34 = vunpack.i.l.bf16 %v2490_v32  ;;  %v502_v42 = vsel %vm501_vm6, %v492_v30, %v2476_v21  ;;  %vm1029_vm6 = vcmask 367616  }
  0xb5   : > { %1157 = vrot.lane.b32.xlu1 %v2842_v4, %s2740_s17  ;;  %2138 = vmatprep.subr.bf16.mxu0 %v2137_v31 }
  0xb6   : > { %1155 = vrot.lane.b32.xlu0 %v2840_v3, %s2740_s17  ;;  %v538_v36 = vsel %vm534_vm7, %v2491_v34, %v2492_v33  ;;  %v537_v38 = vsel %vm534_vm7, %v2487_v24, %v2491_v34 }
  0xb7   : > { %v2495_v2 = vpop.permute.xlu1 %2494  ;;  %v525_v39 = vpop.permute.xlu0 %524  ;;  %v2189_v40 = vpack.c.bf16 %v538_v36, %v505_v35  ;;  %v2191_v41 = vpack.c.bf16 %v537_v38, %v504_v37 }
  0xb8   : > { %v535_v43 = vsel %vm534_vm7, %v525_v39, %v2486_v25  ;;  %v2497_v4 = vunpack.i.h.bf16 %v2495_v2  ;;  %v2496_v3 = vunpack.i.l.bf16 %v2495_v2  ;;  %vm1062_vm7 = vcmask 359424  }
  0xb9   : > { %1151 = vrot.lane.b32.xlu1 %v2836_v1, %s2740_s17  ;;  %v2139_v44 = vpack.c.bf16 %v535_v43, %v502_v42  ;;  %2190 = vmatprep.subr.bf16.mxu1 %v2189_v40 }
  0xba   : > { %1159 = vrot.lane.b32.xlu0 %v2844_v5, %s2740_s17  ;;  %2192 = vmatpush1.bf16.msra.mxu1 %v2191_v41  ;;  %v569_v49 = vsel %vm567_vm8, %v2496_v3, %v2497_v4 }
  0xbb   : > { %v2505_v45 = vpop.permute.xlu1 %2504  ;;  %v2500_v48 = vpop.permute.xlu0 %2499  ;;  %2140 = vmatpush1.bf16.msra.mxu0 %v2139_v44 }
  0xbc   : > { %v2507_v46 = vunpack.i.h.bf16 %v2505_v45  ;;  %v2506_v47 = vunpack.i.l.bf16 %v2505_v45  ;;  %v2502_v51 = vunpack.i.h.bf16 %v2500_v48  ;;  %v2501_v1 = vunpack.i.l.bf16 %v2500_v48 }
  0xbe   : > { %v602_v50 = vsel %vm600_vm9, %v2506_v47, %v2507_v46  ;;  %v571_v57 = vsel %vm567_vm8, %v2501_v1, %v2502_v51  ;;  %v570_v59 = vsel %vm567_vm8, %v2497_v4, %v2501_v1 }
  0xbf   : > { %v558_v52 = vpop.permute.xlu1 %557  ;;  %v2141_v53 = vpack.c.bf16 %v602_v50, %v569_v49  ;;  %v2510_v54 = vpop.permute.xlu0 %2509 }
  0xc0   : > { %v2512_v55 = vunpack.i.h.bf16 %v2510_v54  ;;  %v2511_v5 = vunpack.i.l.bf16 %v2510_v54  ;;  %v568_v0 = vsel %vm567_vm8, %v558_v52, %v2496_v3  ;;  %vm1095_vm8 = vcmask 293888  }
  0xc1   : > { %2142 = vmatprep.subr.bf16.mxu0 %v2141_v53 }
  0xc2   : > { %v604_v58 = vsel %vm600_vm9, %v2511_v5, %v2512_v55  ;;  %v603_v60 = vsel %vm600_vm9, %v2507_v46, %v2511_v5 }
  0xc3   : > { %v2515_v56 = vpop.permute.xlu1 %2514  ;;  %v591_v61 = vpop.permute.xlu0 %590  ;;  %v2193_v62 = vpack.c.bf16 %v604_v58, %v571_v57  ;;  %v2195_v63 = vpack.c.bf16 %v603_v60, %v570_v59 }
  0xc4   : > { %v601_v6 = vsel %vm600_vm9, %v591_v61, %v2506_v47  ;;  %v2517_v7 = vunpack.i.h.bf16 %v2515_v56  ;;  %v2516_v10 = vunpack.i.l.bf16 %v2515_v56  ;;  %vm1128_vm9 = vcmask 285696  }
  0xc5   : > { %v2143_v11 = vpack.c.bf16 %v601_v6, %v568_v0  ;;  %2194 = vmatprep.subr.bf16.mxu1 %v2193_v62 }
  0xc6   : > { %2196 = vmatpush1.bf16.msra.mxu1 %v2195_v63  ;;  %v635_v16 = vsel %vm633_vm10, %v2516_v10, %v2517_v7 }
  0xc7   : > { %v2525_v12 = vpop.permute.xlu1 %2524  ;;  %v2520_v15 = vpop.permute.xlu0 %2519  ;;  %2144 = vmatpush1.bf16.msra.mxu0 %v2143_v11 }
  0xc8   : > { %v2527_v13 = vunpack.i.h.bf16 %v2525_v12  ;;  %v2526_v14 = vunpack.i.l.bf16 %v2525_v12  ;;  %v2522_v18 = vunpack.i.h.bf16 %v2520_v15  ;;  %v2521_v8 = vunpack.i.l.bf16 %v2520_v15 }
  0xca   : > { %v668_v17 = vsel %vm666_vm11, %v2526_v14, %v2527_v13  ;;  %v637_v25 = vsel %vm633_vm10, %v2521_v8, %v2522_v18  ;;  %v636_v27 = vsel %vm633_vm10, %v2517_v7, %v2521_v8 }
  0xcb   : > { %v624_v19 = vpop.permute.xlu1 %623  ;;  %v2145_v20 = vpack.c.bf16 %v668_v17, %v635_v16  ;;  %v2530_v21 = vpop.permute.xlu0 %2529 }
  0xcc   : > { %v2532_v22 = vunpack.i.h.bf16 %v2530_v21  ;;  %v2531_v23 = vunpack.i.l.bf16 %v2530_v21  ;;  %v634_v31 = vsel %vm633_vm10, %v624_v19, %v2516_v10  ;;  %vm1161_vm10 = vcmask 277504  }
  0xcd   : > { %2146 = vmatprep.subr.bf16.mxu0 %v2145_v20 }
  0xce   : > { %v670_v26 = vsel %vm666_vm11, %v2531_v23, %v2532_v22  ;;  %v669_v9 = vsel %vm666_vm11, %v2527_v13, %v2531_v23 }
  0xcf   : > { %v2535_v24 = vpop.permute.xlu1 %2534  ;;  %v657_v28 = vpop.permute.xlu0 %656  ;;  %v2197_v29 = vpack.c.bf16 %v670_v26, %v637_v25  ;;  %v2199_v30 = vpack.c.bf16 %v669_v9, %v636_v27 }
  0xd0   : > { %v667_v32 = vsel %vm666_vm11, %v657_v28, %v2526_v14  ;;  %v2537_v33 = vunpack.i.h.bf16 %v2535_v24  ;;  %v2536_v34 = vunpack.i.l.bf16 %v2535_v24  ;;  %vm1786_vm11 = vcmask (!%p1980_p8), 7168  }
  0xd1   : > { %v2147_v2 = vpack.c.bf16 %v667_v32, %v634_v31  ;;  %2198 = vmatprep.subr.bf16.mxu1 %v2197_v29 }
  0xd2   : > { %2200 = vmatpush1.bf16.msra.mxu1 %v2199_v30  ;;  %v701_v39 = vsel %vm699_vm12, %v2536_v34, %v2537_v33 }
  0xd3   : > { %v2545_v35 = vpop.permute.xlu1 %2544  ;;  %v2540_v38 = vpop.permute.xlu0 %2539  ;;  %2148 = vmatpush1.bf16.msra.mxu0 %v2147_v2 }
  0xd4   : > { %v2547_v36 = vunpack.i.h.bf16 %v2545_v35  ;;  %v2546_v37 = vunpack.i.l.bf16 %v2545_v35  ;;  %v2542_v41 = vunpack.i.h.bf16 %v2540_v38  ;;  %v2541_v42 = vunpack.i.l.bf16 %v2540_v38 }
  0xd6   : > { %v734_v40 = vsel %vm732_vm13, %v2546_v37, %v2547_v36  ;;  %v703_v47 = vsel %vm699_vm12, %v2541_v42, %v2542_v41  ;;  %v702_v49 = vsel %vm699_vm12, %v2537_v33, %v2541_v42 }
  0xd7   : > { %v690_v43 = vpop.permute.xlu1 %689  ;;  %v2149_v4 = vpack.c.bf16 %v734_v40, %v701_v39  ;;  %v2550_v3 = vpop.permute.xlu0 %2549 }
  0xd8   : > { %v2552_v44 = vunpack.i.h.bf16 %v2550_v3  ;;  %v2551_v45 = vunpack.i.l.bf16 %v2550_v3  ;;  %v700_v53 = vsel %vm699_vm12, %v690_v43, %v2536_v34 }
  0xd9   : > { %2150 = vmatprep.subr.bf16.mxu0 %v2149_v4 }
  0xda   : > { %v736_v48 = vsel %vm732_vm13, %v2551_v45, %v2552_v44  ;;  %v735_v50 = vsel %vm732_vm13, %v2547_v36, %v2551_v45 }
  0xdb   : > { %v2555_v46 = vpop.permute.xlu1 %2554  ;;  %v723_v51 = vpop.permute.xlu0 %722  ;;  %v2201_v1 = vpack.c.bf16 %v736_v48, %v703_v47  ;;  %v2203_v52 = vpack.c.bf16 %v735_v50, %v702_v49 }
  0xdc   : > { %v733_v54 = vsel %vm732_vm13, %v723_v51, %v2546_v37  ;;  %v2557_v55 = vunpack.i.h.bf16 %v2555_v46  ;;  %v2556_v5 = vunpack.i.l.bf16 %v2555_v46 }
  0xdd   : > { %v2151_v56 = vpack.c.bf16 %v733_v54, %v700_v53  ;;  %2202 = vmatprep.subr.bf16.mxu1 %v2201_v1 }
  0xde   : > { %2204 = vmatpush1.bf16.msra.mxu1 %v2203_v52  ;;  %v767_v61 = vsel %vm765_vm14, %v2556_v5, %v2557_v55 }
  0xdf   : > { %v2565_v57 = vpop.permute.xlu1 %2564  ;;  %v2560_v60 = vpop.permute.xlu0 %2559  ;;  %2152 = vmatpush1.bf16.msra.mxu0 %v2151_v56 }
  0xe0   : > { %v2567_v58 = vunpack.i.h.bf16 %v2565_v57  ;;  %v2566_v59 = vunpack.i.l.bf16 %v2565_v57  ;;  %v2562_v63 = vunpack.i.h.bf16 %v2560_v60  ;;  %v2561_v0 = vunpack.i.l.bf16 %v2560_v60 }
  0xe2   : > { %v800_v62 = vsel %vm798_vm15, %v2566_v59, %v2567_v58  ;;  %v769_v14 = vsel %vm765_vm14, %v2561_v0, %v2562_v63  ;;  %v768_v16 = vsel %vm765_vm14, %v2557_v55, %v2561_v0 }
  0xe3   : > { %v756_v6 = vpop.permute.xlu1 %755  ;;  %v2153_v7 = vpack.c.bf16 %v800_v62, %v767_v61  ;;  %v2570_v10 = vpop.permute.xlu0 %2569 }
  0xe4   : > { %v2572_v11 = vunpack.i.h.bf16 %v2570_v10  ;;  %v2571_v12 = vunpack.i.l.bf16 %v2570_v10  ;;  %v766_v20 = vsel %vm765_vm14, %v756_v6, %v2556_v5 }
  0xe5   : > { %2154 = vmatprep.subr.bf16.mxu0 %v2153_v7 }
  0xe6   : > { %v802_v15 = vsel %vm798_vm15, %v2571_v12, %v2572_v11  ;;  %v801_v17 = vsel %vm798_vm15, %v2567_v58, %v2571_v12 }
  0xe7   : > { %v2575_v13 = vpop.permute.xlu1 %2574  ;;  %v789_v18 = vpop.permute.xlu0 %788  ;;  %v2205_v8 = vpack.c.bf16 %v802_v15, %v769_v14  ;;  %v2207_v19 = vpack.c.bf16 %v801_v17, %v768_v16 }
  0xe8   : > { %v799_v21 = vsel %vm798_vm15, %v789_v18, %v2566_v59  ;;  %v2577_v22 = vunpack.i.h.bf16 %v2575_v13  ;;  %v2576_v23 = vunpack.i.l.bf16 %v2575_v13 }
  0xe9   : > { %v2155_v24 = vpack.c.bf16 %v799_v21, %v766_v20  ;;  %2206 = vmatprep.subr.bf16.mxu1 %v2205_v8 }
  0xea   : > { %2208 = vmatpush1.bf16.msra.mxu1 %v2207_v19  ;;  %v833_v28 = vsel %vm831_vm0, %v2576_v23, %v2577_v22 }
  0xeb   : > { %v2585_v25 = vpop.permute.xlu1 %2584  ;;  %v2580_v9 = vpop.permute.xlu0 %2579  ;;  %2156 = vmatpush1.bf16.msra.mxu0 %v2155_v24 }
  0xec   : > { %v2587_v26 = vunpack.i.h.bf16 %v2585_v25  ;;  %v2586_v27 = vunpack.i.l.bf16 %v2585_v25  ;;  %v2582_v30 = vunpack.i.h.bf16 %v2580_v9  ;;  %v2581_v31 = vunpack.i.l.bf16 %v2580_v9 }
  0xee   : > { %v866_v29 = vsel %vm864_vm1, %v2586_v27, %v2587_v26  ;;  %v835_v37 = vsel %vm831_vm0, %v2581_v31, %v2582_v30  ;;  %v834_v39 = vsel %vm831_vm0, %v2577_v22, %v2581_v31 }
  0xef   : > { %v822_v32 = vpop.permute.xlu1 %821  ;;  %v2157_v33 = vpack.c.bf16 %v866_v29, %v833_v28  ;;  %v2590_v34 = vpop.permute.xlu0 %2589 }
  0xf0   : > { %v2592_v2 = vunpack.i.h.bf16 %v2590_v34  ;;  %v2591_v35 = vunpack.i.l.bf16 %v2590_v34  ;;  %v832_v4 = vsel %vm831_vm0, %v822_v32, %v2576_v23 }
  0xf1   : > { %2158 = vmatprep.subr.bf16.mxu0 %v2157_v33 }
  0xf2   : > { %v868_v38 = vsel %vm864_vm1, %v2591_v35, %v2592_v2  ;;  %v867_v40 = vsel %vm864_vm1, %v2587_v26, %v2591_v35 }
  0xf3   : > { %v2595_v36 = vpop.permute.xlu1 %2594  ;;  %v855_v41 = vpop.permute.xlu0 %854  ;;  %v2209_v42 = vpack.c.bf16 %v868_v38, %v835_v37  ;;  %v2211_v43 = vpack.c.bf16 %v867_v40, %v834_v39 }
  0xf4   : > { %v865_v3 = vsel %vm864_vm1, %v855_v41, %v2586_v27  ;;  %v2597_v44 = vunpack.i.h.bf16 %v2595_v36  ;;  %v2596_v45 = vunpack.i.l.bf16 %v2595_v36 }
  0xf5   : > { %v2159_v46 = vpack.c.bf16 %v865_v3, %v832_v4  ;;  %2210 = vmatprep.subr.bf16.mxu1 %v2209_v42 }
  0xf6   : > { %2212 = vmatpush1.bf16.msra.mxu1 %v2211_v43  ;;  %v899_v51 = vsel %vm897_vm2, %v2596_v45, %v2597_v44 }
  0xf7   : > { %v2605_v47 = vpop.permute.xlu1 %2604  ;;  %v2600_v50 = vpop.permute.xlu0 %2599  ;;  %2160 = vmatpush1.bf16.msra.mxu0 %v2159_v46 }
  0xf8   : > { %v2607_v48 = vunpack.i.h.bf16 %v2605_v47  ;;  %v2606_v49 = vunpack.i.l.bf16 %v2605_v47  ;;  %v2602_v52 = vunpack.i.h.bf16 %v2600_v50  ;;  %v2601_v53 = vunpack.i.l.bf16 %v2600_v50 }
  0xfa   : > { %v932_v1 = vsel %vm930_vm3, %v2606_v49, %v2607_v48  ;;  %v901_v59 = vsel %vm897_vm2, %v2601_v53, %v2602_v52  ;;  %v900_v61 = vsel %vm897_vm2, %v2597_v44, %v2601_v53 }
  0xfb   : > { %v888_v54 = vpop.permute.xlu1 %887  ;;  %v2161_v55 = vpack.c.bf16 %v932_v1, %v899_v51  ;;  %v2610_v5 = vpop.permute.xlu0 %2609 }
  0xfc   : > { %v2612_v56 = vunpack.i.h.bf16 %v2610_v5  ;;  %v2611_v57 = vunpack.i.l.bf16 %v2610_v5  ;;  %v898_v7 = vsel %vm897_vm2, %v888_v54, %v2596_v45 }
  0xfd   : > { %2162 = vmatprep.subr.bf16.mxu0 %v2161_v55 }
  0xfe   : > { %v934_v60 = vsel %vm930_vm3, %v2611_v57, %v2612_v56  ;;  %v933_v62 = vsel %vm930_vm3, %v2607_v48, %v2611_v57 }
  0xff   : > { %v2615_v58 = vpop.permute.xlu1 %2614  ;;  %v921_v63 = vpop.permute.xlu0 %920  ;;  %v2213_v0 = vpack.c.bf16 %v934_v60, %v901_v59  ;;  %v2215_v6 = vpack.c.bf16 %v933_v62, %v900_v61 }
 0x100   : > { %v931_v10 = vsel %vm930_vm3, %v921_v63, %v2606_v49  ;;  %v2617_v11 = vunpack.i.h.bf16 %v2615_v58  ;;  %v2616_v12 = vunpack.i.l.bf16 %v2615_v58 }
 0x101   : > { %v2163_v13 = vpack.c.bf16 %v931_v10, %v898_v7  ;;  %2214 = vmatprep.subr.bf16.mxu1 %v2213_v0 }
 0x102   : > { %2216 = vmatpush1.bf16.msra.mxu1 %v2215_v6  ;;  %v965_v18 = vsel %vm963_vm4, %v2616_v12, %v2617_v11 }
 0x103   : > { %v2625_v14 = vpop.permute.xlu1 %2624  ;;  %v2620_v17 = vpop.permute.xlu0 %2619  ;;  %2164 = vmatpush1.bf16.msra.mxu0 %v2163_v13 }
 0x104   : > { %v2627_v15 = vunpack.i.h.bf16 %v2625_v14  ;;  %v2626_v16 = vunpack.i.l.bf16 %v2625_v14  ;;  %v2622_v19 = vunpack.i.h.bf16 %v2620_v17  ;;  %v2621_v20 = vunpack.i.l.bf16 %v2620_v17 }
 0x106   : > { %v998_v8 = vsel %vm996_vm5, %v2626_v16, %v2627_v15  ;;  %v967_v27 = vsel %vm963_vm4, %v2621_v20, %v2622_v19  ;;  %v966_v28 = vsel %vm963_vm4, %v2617_v11, %v2621_v20 }
 0x107   : > { %v954_v21 = vpop.permute.xlu1 %953  ;;  %v2165_v22 = vpack.c.bf16 %v998_v8, %v965_v18  ;;  %v2630_v23 = vpop.permute.xlu0 %2629 }
 0x108   : > { %v2632_v24 = vunpack.i.h.bf16 %v2630_v23  ;;  %v2631_v25 = vunpack.i.l.bf16 %v2630_v23  ;;  %v964_v33 = vsel %vm963_vm4, %v954_v21, %v2616_v12 }
 0x109   : > { %2166 = vmatprep.subr.bf16.mxu0 %v2165_v22 }
 0x10a   : > { %v1000_v9 = vsel %vm996_vm5, %v2631_v25, %v2632_v24  ;;  %v999_v29 = vsel %vm996_vm5, %v2627_v15, %v2631_v25 }
 0x10b   : > { %v2635_v26 = vpop.permute.xlu1 %2634  ;;  %v987_v30 = vpop.permute.xlu0 %986  ;;  %v2217_v31 = vpack.c.bf16 %v1000_v9, %v967_v27  ;;  %v2219_v32 = vpack.c.bf16 %v999_v29, %v966_v28  ;;  %v1450_v27 = vld [vmem:[%s2813_s8 + $0x80] sm:$0xff]  ;;  %v1451_v9 = vld [vmem:[%s2813_s8 + $0x88] sm:$0xff] }
 0x10c   : > { %v997_v34 = vsel %vm996_vm5, %v987_v30, %v2626_v16  ;;  %v2637_v2 = vunpack.i.h.bf16 %v2635_v26  ;;  %v2636_v35 = vunpack.i.l.bf16 %v2635_v26  ;;  %v1434_v29 = vld [vmem:[%s2813_s8] sm:$0xff]  ;;  %v1435_v30 = vld [vmem:[%s2813_s8 + $0x8] sm:$0xff] }
 0x10d   : > { %v2167_v36 = vpack.c.bf16 %v997_v34, %v964_v33  ;;  %2218 = vmatprep.subr.bf16.mxu1 %v2217_v31  ;;  %v1482_v31 = vld [vmem:[%s2813_s8 + $0x180] sm:$0xff]  ;;  %v1452_v33 = vld [vmem:[%s2813_s8 + $0x90] sm:$0xff]  ;;  %v1453_v34 = vld [vmem:[%s2813_s8 + $0x98] sm:$0xff] }
 0x10e   : > { %2220 = vmatpush1.bf16.msra.mxu1 %v2219_v32  ;;  %v1031_v41 = vsel %vm1029_vm6, %v2636_v35, %v2637_v2  ;;  %v1483_v32 = vld [vmem:[%s2813_s8 + $0x188] sm:$0xff] }
 0x10f   : > { %v2645_v37 = vpop.permute.xlu1 %2644  ;;  %2168 = vmatpush1.bf16.msra.mxu0 %v2167_v36  ;;  %v3067_v36 = vpack.c.bf16 %v1451_v9, %v1450_v27  ;;  %v1474_v9 = vld [vmem:[%s2813_s8 + $0x140] sm:$0xff] }
 0x110   : > { %v2647_v38 = vunpack.i.h.bf16 %v2645_v37  ;;  %v2646_v39 = vunpack.i.l.bf16 %v2645_v37  ;;  %v2640_v40 = vpop.permute.xlu0 %2639  ;;  %v1466_v37 = vld [vmem:[%s2813_s8 + $0x100] sm:$0xff] }
 0x111   : > { %v2642_v43 = vunpack.i.h.bf16 %v2640_v40  ;;  %v2641_v4 = vunpack.i.l.bf16 %v2640_v40 }
 0x112   : > { %v1064_v42 = vsel %vm1062_vm7, %v2646_v39, %v2647_v38 }
 0x113   : > { %v1020_v3 = vpop.permute.xlu1 %1019  ;;  %v2169_v44 = vpack.c.bf16 %v1064_v42, %v1031_v41  ;;  %v1033_v49 = vsel %vm1029_vm6, %v2641_v4, %v2642_v43  ;;  %v1032_v51 = vsel %vm1029_vm6, %v2637_v2, %v2641_v4  ;;  %v3072_v41 = vpack.c.bf16 %v1435_v30, %v1434_v29  ;;  %v1484_v42 = vld [vmem:[%s2813_s8 + $0x190] sm:$0xff]  ;;  %v1485_v43 = vld [vmem:[%s2813_s8 + $0x198] sm:$0xff] }
 0x114   : > { %v2650_v45 = vpop.permute.xlu0 %2649  ;;  %v1030_v55 = vsel %vm1029_vm6, %v1020_v3, %v2636_v35  ;;  %v1174_v35 = vld [vmem:[%s3258_s1] sm:$0xff]  ;;  %v3077_v3 = vpack.c.bf16 %v1483_v32, %v1482_v31  ;;  %v1492_v30 = vld [vmem:[%s2813_s8 + $0x1d0] sm:$0xff]  ;;  %v1493_v31 = vld [vmem:[%s2813_s8 + $0x1d8] sm:$0xff] }
 0x115   : > { %v2652_v46 = vunpack.i.h.bf16 %v2650_v45  ;;  %v2651_v47 = vunpack.i.l.bf16 %v2650_v45  ;;  %2170 = vmatprep.subr.bf16.mxu0 %v2169_v44  ;;  %v3079_v44 = vpack.c.bf16 %v1453_v34, %v1452_v33  ;;  %v1436_v45 = vld [vmem:[%s2813_s8 + $0x10] sm:$0xff]  ;;  %v1445_v34 = vld [vmem:[%s2813_s8 + $0x58] sm:$0xff] }
 0x116   : > { %v1444_v33 = vld [vmem:[%s2813_s8 + $0x50] sm:$0xff] }
 0x117   : > { %v2655_v48 = vpop.permute.xlu1 %2654  ;;  %v1066_v50 = vsel %vm1062_vm7, %v2651_v47, %v2652_v46  ;;  %v1065_v1 = vsel %vm1062_vm7, %v2647_v38, %v2651_v47  ;;  %v1467_v38 = vld [vmem:[%s2813_s8 + $0x108] sm:$0xff]  ;;  %v1437_v46 = vld [vmem:[%s2813_s8 + $0x18] sm:$0xff] }
 0x118   : > { %v1053_v52 = vpop.permute.xlu0 %1052  ;;  %v2221_v53 = vpack.c.bf16 %v1066_v50, %v1033_v49  ;;  %v2223_v54 = vpack.c.bf16 %v1065_v1, %v1032_v51  ;;  %v2657_v56 = vunpack.i.h.bf16 %v2655_v48  ;;  %v2656_v57 = vunpack.i.l.bf16 %v2655_v48  ;;  %v1454_v49 = vld [vmem:[%s2813_s8 + $0xa0] sm:$0xff]  ;;  %v1455_v50 = vld [vmem:[%s2813_s8 + $0xa8] sm:$0xff]  ;;  %v1468_v1 = vld [vmem:[%s2813_s8 + $0x110] sm:$0xff] }
 0x119   : > { %v1063_v5 = vsel %vm1062_vm7, %v1053_v52, %v2646_v39  ;;  %v3084_v48 = vpack.c.bf16 %v1467_v38, %v1466_v37  ;;  %v3089_v51 = vpack.c.bf16 %v1485_v43, %v1484_v42  ;;  %v1469_v52 = vld [vmem:[%s2813_s8 + $0x118] sm:$0xff]  ;;  %v1463_v37 = vld [vmem:[%s2813_s8 + $0xe8] sm:$0xff]  ;;  %v3170_v38 = vpack.c.bf16 %v1493_v31, %v1492_v30  ;;  %v1494_v43 = vld [vmem:[%s2813_s8 + $0x1e0] sm:$0xff] }
 0x11a   : > { %v2171_v58 = vpack.c.bf16 %v1063_v5, %v1030_v55  ;;  %2222 = vmatprep.subr.bf16.mxu1 %v2221_v53  ;;  %v1097_v63 = vsel %vm1095_vm8, %v2656_v57, %v2657_v56  ;;  %v3094_v53 = vpack.c.bf16 %v1437_v46, %v1436_v45  ;;  %v1487_v55 = vld [vmem:[%s2813_s8 + $0x1a8] sm:$0xff]  ;;  %v3100_v5 = vpack.c.bf16 %v1455_v50, %v1454_v49  ;;  %v1446_v46 = vld [vmem:[%s2813_s8 + $0x60] sm:$0xff]  ;;  %v1464_v50 = vld [vmem:[%s2813_s8 + $0xf0] sm:$0xff] }
 0x11b   : > { %v2665_v59 = vpop.permute.xlu1 %2664  ;;  %2224 = vmatpush1.bf16.msra.mxu1 %v2223_v54  ;;  %v1486_v54 = vld [vmem:[%s2813_s8 + $0x1a0] sm:$0xff]  ;;  %v3175_v42 = vpack.c.bf16 %v1445_v34, %v1444_v33 }
 0x11c   : > { %v2667_v60 = vunpack.i.h.bf16 %v2665_v59  ;;  %v2666_v61 = vunpack.i.l.bf16 %v2665_v59  ;;  %v2660_v62 = vpop.permute.xlu0 %2659  ;;  %2172 = vmatpush1.bf16.msra.mxu0 %v2171_v58  ;;  %v3105_v58 = vpack.c.bf16 %v1469_v52, %v1468_v1  ;;  %v1456_v59 = vld [vmem:[%s2813_s8 + $0xb0] sm:$0xff]  ;;  %v1465_v1 = vld [vmem:[%s2813_s8 + $0xf8] sm:$0xff] }
 0x11d   : > { %v2662_v6 = vunpack.i.h.bf16 %v2660_v62  ;;  %v2661_v7 = vunpack.i.l.bf16 %v2660_v62  ;;  %v1470_v62 = vld [vmem:[%s2813_s8 + $0x120] sm:$0xff] }
 0x11e   : > { %v1130_v0 = vsel %vm1128_vm9, %v2666_v61, %v2667_v60 }
 0x11f   : > { %v1086_v10 = vpop.permute.xlu1 %1085  ;;  %v2173_v11 = vpack.c.bf16 %v1130_v0, %v1097_v63  ;;  %v1099_v16 = vsel %vm1095_vm8, %v2661_v7, %v2662_v6  ;;  %v1098_v18 = vsel %vm1095_vm8, %v2657_v56, %v2661_v7  ;;  %v1438_v56 = vld [vmem:[%s2813_s8 + $0x20] sm:$0xff]  ;;  %v1471_v63 = vld [vmem:[%s2813_s8 + $0x128] sm:$0xff]  ;;  %v1488_v6 = vld [vmem:[%s2813_s8 + $0x1b0] sm:$0xff] }
 0x120   : > { %v2670_v12 = vpop.permute.xlu0 %2669  ;;  %v1096_v22 = vsel %vm1095_vm8, %v1086_v10, %v2656_v57  ;;  %v1439_v57 = vld [vmem:[%s2813_s8 + $0x28] sm:$0xff]  ;;  %v1489_v7 = vld [vmem:[%s2813_s8 + $0x1b8] sm:$0xff] }
 0x121   : > { %v2672_v13 = vunpack.i.h.bf16 %v2670_v12  ;;  %v2671_v14 = vunpack.i.l.bf16 %v2670_v12  ;;  %2174 = vmatprep.subr.bf16.mxu0 %v2173_v11  ;;  %v3115_v0 = vpack.c.bf16 %v1439_v57, %v1438_v56  ;;  %v1440_v11 = vld [vmem:[%s2813_s8 + $0x30] sm:$0xff]  ;;  %v1441_v12 = vld [vmem:[%s2813_s8 + $0x38] sm:$0xff]  ;;  %v2257_v57 = vpack.c.bf16 %v1465_v1, %v1464_v50 }
 0x123   : > { %v1154_v15 = vpop.permute.xlu1 %1153  ;;  %v1132_v17 = vsel %vm1128_vm9, %v2671_v14, %v2672_v13  ;;  %v1131_v8 = vsel %vm1128_vm9, %v2667_v60, %v2671_v14  ;;  %v1457_v60 = vld [vmem:[%s2813_s8 + $0xb8] sm:$0xff]  ;;  %v3125_v13 = vpack.c.bf16 %v1471_v63, %v1470_v62  ;;  %v1458_v14 = vld [vmem:[%s2813_s8 + $0xc0] sm:$0xff] }
 0x124   : > { %v1119_v19 = vpop.permute.xlu0 %1118  ;;  %v2225_v20 = vpack.c.bf16 %v1132_v17, %v1099_v16  ;;  %v2227_v21 = vpack.c.bf16 %v1131_v8, %v1098_v18  ;;  %v3120_v10 = vpack.c.bf16 %v1457_v60, %v1456_v59  ;;  %v3130_v16 = vpack.c.bf16 %v1489_v7, %v1488_v6  ;;  %v1472_v17 = vld [vmem:[%s2813_s8 + $0x130] sm:$0xff]  ;;  %v1473_v18 = vld [vmem:[%s2813_s8 + $0x138] sm:$0xff] }
 0x125   : > { %v1129_v23 = vsel %vm1128_vm9, %v1119_v19, %v2666_v61  ;;  %v3110_v61 = vpack.c.bf16 %v1487_v55, %v1486_v54  ;;  %v3135_v8 = vpack.c.bf16 %v1441_v12, %v1440_v11  ;;  %v1490_v19 = vld [vmem:[%s2813_s8 + $0x1c0] sm:$0xff]  ;;  %v1479_v55 = vld [vmem:[%s2813_s8 + $0x168] sm:$0xff]  ;;  %v1448_v59 = vld [vmem:[%s2813_s8 + $0x70] sm:$0xff] }
 0x126   : > { %v2175_v24 = vpack.c.bf16 %v1129_v23, %v1096_v22  ;;  %2226 = vmatprep.subr.bf16.mxu1 %v2225_v20  ;;  %v1491_v20 = vld [vmem:[%s2813_s8 + $0x1c8] sm:$0xff]  ;;  %v1442_v22 = vld [vmem:[%s2813_s8 + $0x40] sm:$0xff]  ;;  %v1449_v60 = vld [vmem:[%s2813_s8 + $0x78] sm:$0xff] }
 0x127   : > { %v1158_v25 = vpop.permute.xlu1 %1157  ;;  %2228 = vmatpush1.bf16.msra.mxu1 %v2227_v21  ;;  %v1443_v23 = vld [vmem:[%s2813_s8 + $0x48] sm:$0xff]  ;;  %v3150_v27 = vpack.c.bf16 %v1491_v20, %v1490_v19  ;;  %v1478_v54 = vld [vmem:[%s2813_s8 + $0x160] sm:$0xff]  ;;  %v2259_v63 = vpack.c.bf16 %v1449_v60, %v1448_v59  ;;  %v1496_v6 = vld [vmem:[%s2813_s8 + $0x1f0] sm:$0xff] }
 0x128   : > { %v1156_v26 = vpop.permute.xlu0 %1155  ;;  %2176 = vmatpush1.bf16.msra.mxu0 %v2175_v24  ;;  %v3145_v24 = vpack.c.bf16 %v1473_v18, %v1472_v17  ;;  %v3155_v29 = vpack.c.bf16 %v1443_v23, %v1442_v22  ;;  %v2287_v62 = vpack.c.bf16 %v1479_v55, %v1478_v54  ;;  %v1497_v7 = vld [vmem:[%s2813_s8 + $0x1f8] sm:$0xff]  ;;  %v1480_v12 = vld [vmem:[%s2813_s8 + $0x170] sm:$0xff] }
 0x129   : > { %v1163_v28 = vsel %vm1161_vm10, %v1154_v15, %v1156_v26  ;;  %v1164_v47 = vsel %vm1161_vm10, %v1156_v26, %v1158_v25  ;;  %v1461_v26 = vld [vmem:[%s2813_s8 + $0xd8] sm:$0xff]  ;;  %v2289_v11 = vpack.c.bf16 %v1497_v7, %v1496_v6 }
 0x12a   : > { %1340 = vmatprep.subr.mxu0 %v1163_v28  ;;  %v1475_v28 = vld [vmem:[%s2813_s8 + $0x148] sm:$0xff] }
 0x12b   : > { %v1152_v2 = vpop.permute.xlu1 %1151 }
 0x12c   : > { %v1160_v39 = vpop.permute.xlu0 %1159  ;;  %v1162_v40 = vsel %vm1161_vm10, %v1152_v2, %v1154_v15  ;;  %v1459_v15 = vld [vmem:[%s2813_s8 + $0xc8] sm:$0xff]  ;;  %v3165_v2 = vpack.c.bf16 %v1475_v28, %v1474_v9 }
 0x12d   : > { %1341 = vmatpush1.msra.mxu0 %v1162_v40  ;;  %v1165_v4 = vsel %vm1161_vm10, %v1158_v25, %v1160_v39  ;;  %v3140_v21 = vpack.c.bf16 %v1459_v15, %v1458_v14  ;;  %v1460_v25 = vld [vmem:[%s2813_s8 + $0xd0] sm:$0xff]  ;;  %v1477_v40 = vld [vmem:[%s2813_s8 + $0x158] sm:$0xff] }
 0x12e   : > { %1353 = vmatmul.mubr.f32.vlgmr.msra.gmra.mrb[0].mxu0 %v1174_v35  ;;  %1411 = vmatprep.subr.mxu1 %v1165_v4  ;;  %v3160_v32 = vpack.c.bf16 %v1461_v26, %v1460_v25  ;;  %v1476_v39 = vld [vmem:[%s2813_s8 + $0x150] sm:$0xff]  ;;  %v1495_v4 = vld [vmem:[%s2813_s8 + $0x1e8] sm:$0xff]  ;;  %v1481_v14 = vld [vmem:[%s2813_s8 + $0x178] sm:$0xff] }
 0x12f   : > { %1412 = vmatpush1.msra.mxu1 %v1164_v47  ;;  %2230 = vmatprep.subr.bf16.mxu0 %v3067_v36  ;;  %v1447_v47 = vld [vmem:[%s2813_s8 + $0x68] sm:$0xff]  ;;  %v3185_v49 = vpack.c.bf16 %v1477_v40, %v1476_v39  ;;  %v3190_v52 = vpack.c.bf16 %v1495_v4, %v1494_v43  ;;  %v2291_v15 = vpack.c.bf16 %v1481_v14, %v1480_v12 }
 0x130   : > { %1424 = vmatmul.mubr.f32.vlgmr.msra.gmra.mrb[0].mxu1 %v1174_v35  ;;  %2232 = vmatpush3.bf16.msra.mxu0 %v3072_v41  ;;  %v1462_v35 = vld [vmem:[%s2813_s8 + $0xe0] sm:$0xff]  ;;  %v2255_v56 = vpack.c.bf16 %v1447_v47, %v1446_v46 }
 0x131   : > { %2262 = vmatprep.subr.bf16.mxu1 %v3077_v3  ;;  %2234 = vmatprep.subr.bf16.mxu0 %v3079_v44  ;;  %v3180_v45 = vpack.c.bf16 %v1463_v37, %v1462_v35 }
 0x132   : > { %2264 = vmatpush3.bf16.msra.mxu1 %v3084_v48 }
 0x133   : > { %2266 = vmatprep.subr.bf16.mxu1 %v3089_v51 }
 0x134   : > { %2236 = vmatpush3.bf16.msra.mxu0 %v3094_v53 }
 0x135   : > { %2238 = vmatprep.subr.bf16.mxu0 %v3100_v5 }
 0x136   : > { %2268 = vmatpush3.bf16.msra.mxu1 %v3105_v58 }
 0x137   : > { %2270 = vmatprep.subr.bf16.mxu1 %v3110_v61 }
 0x138   : > { %2240 = vmatpush3.bf16.msra.mxu0 %v3115_v0 }
 0x139   : > { %2242 = vmatprep.subr.bf16.mxu0 %v3120_v10 }
 0x13a   : > { %2272 = vmatpush3.bf16.msra.mxu1 %v3125_v13 }
 0x13b   : > { %2274 = vmatprep.subr.bf16.mxu1 %v3130_v16 }
 0x13c   : > { %2244 = vmatpush3.bf16.msra.mxu0 %v3135_v8 }
 0x13d   : > { %2246 = vmatprep.subr.bf16.mxu0 %v3140_v21 }
 0x13e   : > { %2276 = vmatpush3.bf16.msra.mxu1 %v3145_v24 }
 0x13f   : > { %2278 = vmatprep.subr.bf16.mxu1 %v3150_v27 }
 0x140   : > { %2248 = vmatpush3.bf16.msra.mxu0 %v3155_v29 }
 0x141   : > { %2250 = vmatprep.subr.bf16.mxu0 %v3160_v32 }
 0x142   : > { %2280 = vmatpush3.bf16.msra.mxu1 %v3165_v2 }
 0x143   : > { %2282 = vmatprep.subr.bf16.mxu1 %v3170_v38 }
 0x144   : > { %2252 = vmatpush3.bf16.msra.mxu0 %v3175_v42 }
 0x145   : > { %2254 = vmatprep.subr.bf16.mxu0 %v3180_v45 }
 0x146   : > { %2284 = vmatpush3.bf16.msra.mxu1 %v3185_v49 }
 0x147   : > { %2286 = vmatprep.subr.bf16.mxu1 %v3190_v52 }
 0x148   : > { %2256 = vmatpush3.bf16.msra.mxu0 %v2255_v56 }
 0x149   : > { %2258 = vmatprep.subr.bf16.mxu0 %v2257_v57 }
 0x14a   : > { %2288 = vmatpush3.bf16.msra.mxu1 %v2287_v62 }
 0x14b   : > { %2290 = vmatprep.subr.bf16.mxu1 %v2289_v11 }
 0x14c   : > { %2260 = vmatpush3.bf16.msra.mxu0 %v2259_v63 }
 0x14d   : > { %2294 = vmatprep.subr.bf16.mxu0 %v3067_v36 }
 0x14e   : > { %2292 = vmatpush3.bf16.msra.mxu1 %v2291_v15 }
 0x14f   : > { %2326 = vmatprep.subr.bf16.mxu1 %v3077_v3 }
 0x201   : > { %v1354_v17 = vpop.f32.mrb[0].mxu0 }
 0x202   : > { %1430 = vst [vmem:[%s2829_s29] sm:$0xff] %v1354_v17  ;;  %v1356_v18 = vpop.f32.mrb[1].mxu0 }
 0x203   : > { %1431 = vst [vmem:[%s2829_s29 + $0x8] sm:$0xff] %v1356_v18  ;;  %v1639_v19 = vmul.f32 %v1356_v18, %v1356_v18  ;;  %v1425_v20 = vpop.f32.mrb[0].mxu1  ;;  %1562 = vmatprep.mubr.f32.mxu0 %v1356_v18 }
 0x204   : > { %1432 = vst [vmem:[%s2829_s29 + $0x10] sm:$0xff] %v1425_v20  ;;  %v1427_v36 = vpop.f32.mrb[1].mxu1  ;;  %1563 = vmatmul.mubr.f32.vlgmr.msra.gmra.mrb[2].mxu0 %v1354_v17  ;;  %v1640_v3 = vmul.f32 %v1425_v20, %v1425_v20 }
 0x205   : > { %1433 = vst [vmem:[%s2829_s29 + $0x18] sm:$0xff] %v1427_v36  ;;  %v1641_v22 = vmul.f32 %v1427_v36, %v1427_v36  ;;  %2296 = vmatpush3.bf16.msra.mxu0 %v3072_v41  ;;  %1632 = vmatprep.mubr.f32.mxu1 %v1427_v36  ;;  %v1638_v41 = vmul.f32 %v1354_v17, %v1354_v17 }
 0x206   : > { %1633 = vmatmul.mubr.f32.vlgmr.msra.gmra.mrb[2].mxu1 %v1425_v20  ;;  %1706 = vmatprep.mubr.f32.mxu0 %v1639_v19 }
 0x207   : > { %2328 = vmatpush3.bf16.msra.mxu1 %v3084_v48  ;;  %2298 = vmatprep.subr.bf16.mxu0 %v3079_v44 }
 0x208   : > { %1776 = vmatprep.mubr.f32.mxu1 %v1641_v22  ;;  %2330 = vmatprep.subr.bf16.mxu1 %v3089_v51 }
 0x209   : > { %2300 = vmatpush3.bf16.msra.mxu0 %v3094_v53 }
 0x20a   : > { %2302 = vmatprep.subr.bf16.mxu0 %v3100_v5 }
 0x20b   : > { %2332 = vmatpush3.bf16.msra.mxu1 %v3105_v58 }
 0x20c   : > { %2334 = vmatprep.subr.bf16.mxu1 %v3110_v61 }
 0x20d   : > { %2304 = vmatpush3.bf16.msra.mxu0 %v3115_v0 }
 0x20e   : > { %2306 = vmatprep.subr.bf16.mxu0 %v3120_v10 }
 0x20f   : > { %2336 = vmatpush3.bf16.msra.mxu1 %v3125_v13 }
 0x210   : > { %2338 = vmatprep.subr.bf16.mxu1 %v3130_v16 }
 0x211   : > { %2308 = vmatpush3.bf16.msra.mxu0 %v3135_v8 }
 0x212   : > { %2310 = vmatprep.subr.bf16.mxu0 %v3140_v21 }
 0x213   : > { %2340 = vmatpush3.bf16.msra.mxu1 %v3145_v24 }
 0x214   : > { %2342 = vmatprep.subr.bf16.mxu1 %v3150_v27 }
 0x215   : > { %2312 = vmatpush3.bf16.msra.mxu0 %v3155_v29 }
 0x216   : > { %2314 = vmatprep.subr.bf16.mxu0 %v3160_v32 }
 0x217   : > { %2344 = vmatpush3.bf16.msra.mxu1 %v3165_v2 }
 0x218   : > { %2346 = vmatprep.subr.bf16.mxu1 %v3170_v38 }
 0x219   : > { %2316 = vmatpush3.bf16.msra.mxu0 %v3175_v42 }
 0x21a   : > { %2318 = vmatprep.subr.bf16.mxu0 %v3180_v45 }
 0x21b   : > { %2348 = vmatpush3.bf16.msra.mxu1 %v3185_v49 }
 0x21c   : > { %2350 = vmatprep.subr.bf16.mxu1 %v3190_v52 }
 0x21d   : > { %2320 = vmatpush3.bf16.msra.mxu0 %v2255_v56 }
 0x21e   : > { %2322 = vmatprep.subr.bf16.mxu0 %v2257_v57 }
 0x21f   : > { %2352 = vmatpush3.bf16.msra.mxu1 %v2287_v62 }
 0x220   : > { %2354 = vmatprep.subr.bf16.mxu1 %v2289_v11 }
 0x221   : > { %2324 = vmatpush3.bf16.msra.mxu0 %v2259_v63 }
 0x223   : > { %2356 = vmatpush3.bf16.msra.mxu1 %v2291_v15 }
 0x224   : > { %1707 = vmatmul.mubr.f32.vlgmr.msra.gmra.mrb[4].mxu0 %v1638_v41 }
 0x226   : > { %1777 = vmatmul.mubr.f32.vlgmr.msra.gmra.mrb[4].mxu1 %v1640_v3 }
 0x2d7   : > { %v2017_v44 = vpop.f32.mrb[2].mxu0 }
 0x2d8   : > { %v2018_v48 = vpop.f32.mrb[3].mxu0 }
 0x2d9   : > { %v2019_v51 = vadd.f32 %v2018_v48, %v2017_v44  ;;  %v2052_v53 = vpop.f32.mrb[2].mxu1 }
 0x2da   : > { %v2053_v5 = vpop.f32.mrb[3].mxu1 }
 0x2db   : > { %v2054_v58 = vadd.f32 %v2053_v5, %v2052_v53 }
 0x2dd   : > { %v1635_v61 = vadd.f32 %v2054_v58, %v2019_v51 }
 0x2df   : > { %1787 = vst.msk [vmem:[%s2818_s12] sm:$0xff] (!%p1980_p8), %vm1786_vm11, %v1635_v61 }
 0x2f7   : > { %v2087_v0 = vpop.f32.mrb[4].mxu0  ;;  %1785 = sbr.rel (%p1980_p8) target bundleno = 768 (0x300), region = 66 }
 0x2f8   : > { %v2088_v10 = vpop.f32.mrb[5].mxu0 }
 0x2f9   : > { %v2089_v13 = vadd.f32 %v2088_v10, %v2087_v0  ;;  %v2122_v16 = vpop.f32.mrb[4].mxu1 }
 0x2fa   : > { %v2123_v8 = vpop.f32.mrb[5].mxu1 }
 0x2fb   : > { %v2124_v21 = vadd.f32 %v2123_v8, %v2122_v16 }
 0x2fd   : > { %v1779_v23 = vadd.f32 %v2124_v21, %v2089_v13 }
 0x2ff   : > { %1788 = vst.msk [vmem:[%s2823_s15] sm:$0xff] %vm1786_vm11, %v1779_v23 }
 0x300 PF: > { %p1981_p9 = scmp.le.s32.totalorder %s2697_s18, 0 }
 0x301   : > { %v1793_v24 = vld [vmem:[%s2818_s12] sm:$0xff] (!%p1981_p9)  ;;  %vm1795_vm12 = vcmask (!%p1981_p9), 7168  }
 0x302   : > { %1792 = sbr.rel (%p1981_p9) target bundleno = 778 (0x30a), region = 70  ;;  %v1794_v26 = vadd.f32 (!%p1981_p9), %v1793_v24, %v1635_v61 }
 0x304   : > { %1796 = vst.msk [vmem:[%s2818_s12] sm:$0xff] (!%p1981_p9), %vm1795_vm12, %v1794_v26 }
 0x306   : > { %v1797_v25 = vld [vmem:[%s2823_s15] sm:$0xff] (!%p1981_p9) }
 0x307   : > { %v1798_v27 = vadd.f32 (!%p1981_p9), %v1797_v25, %v1779_v23 }
 0x309   : > { %1799 = vst.msk [vmem:[%s2823_s15] sm:$0xff] %vm1795_vm12, %v1798_v27 }
 0x30a PF: > { %s16_s22 = sadd.s32 1, %s2713_s22   ;;  %s3266_s8 = sld [smem:[#allocation7_spill]] }
 0x30b   : > { %p13_p10 = scmp.ge.s32.totalorder %s16_s22, 6   ;;  %s3267_s18 = smov %s2705_s20 }
 0x30c   : > { %s3268_s19 = smov %s2709_s21  ;;  %s3269_s20 = smov %s3272_s23 }
 0x30d   :  { %15 = sbr.rel (!%p13_p10) target bundleno = 3 (0x3), region = 133 }
 0x310   : > { %s3270_s21 = smov %s3266_s8 }
 0x314   :  { %1858 = vsyncmov [#allocation4] }
 0x317   :  { %s1859_s12 = vpop.sfrf %1858 }
 0x318   :  { %p1984_p11 = scmp.ne.s32.totalorder %s1859_s12, 0 }
 0x31a   :  { %1863 = shalt.err (%p1984_p11)  }

</bundles_post_ra>
